<compile_context>
chip_gen: v7x
topology: tpu7x:2x2x1
jax: 0.10.0
libtpu: 0.0.40
codegen_flags: <defaults>
</compile_context>

<pallas_src>
import math
import functools

import jax
import jax.numpy as jnp
from jax.experimental import pallas as pl
from jax.experimental.pallas import tpu as pltpu


def mhca_flash_kernel(x_ref, g_ref, k_ref, v_ref,
                      w_q_ref, b_q_ref, w_out_ref, b_out_ref,
                      o_ref,
                      q_scr, m_scr, l_scr, acc_scr,
                      *, num_heads, dk_h, dv_h, mxu_dtype, approx_recip):
    """One (batch, q-tile) block; pre-projected KV tiles stream on the innermost axis."""
    kv = pl.program_id(2)

    @pl.when(kv == 0)
    def _init():
        # Q projection hoisted out of the kv loop: one lane-dense matmul per q tile.
        # 1/sqrt(dk_h) is already folded into w_q / b_q in the wrapper.
        x = x_ref[0]                                                       # (tq, d_in)
        q = jnp.dot(x.astype(mxu_dtype), w_q_ref[...],
                    preferred_element_type=jnp.float32) + b_q_ref[...]     # (tq, d_k) f32
        # Relayout to head-major once per q tile (static per-head lane slices).
        for h in range(num_heads):
            q_scr[h] = q[:, h * dk_h:(h + 1) * dk_h].astype(q_scr.dtype)
        m_scr[...] = jnp.full(m_scr.shape, -jnp.inf, dtype=m_scr.dtype)
        l_scr[...] = jnp.zeros(l_scr.shape, dtype=l_scr.dtype)
        acc_scr[...] = jnp.zeros(acc_scr.shape, dtype=acc_scr.dtype)

    q = q_scr[...]          # (H, tq,  dk_h)  mxu_dtype
    k = k_ref[0]            # (H, tkv, dk_h)  mxu_dtype (pre-projected in wrapper)
    v = v_ref[0]            # (H, tkv, dv_h)  mxu_dtype (pre-projected in wrapper)

    # Head-batched flash (online softmax) update — no per-head slicing in the hot loop.
    s = jnp.einsum('hqd,hkd->hqk', q, k,
                   preferred_element_type=jnp.float32)                     # (H, tq, tkv)
    m_prev = m_scr[...]                                                    # (H, tq, 1)
    m_new = jnp.maximum(m_prev, jnp.max(s, axis=-1, keepdims=True))
    alpha = jnp.exp(m_prev - m_new)
    p = jnp.exp(s - m_new)                                                 # (H, tq, tkv)
    l_scr[...] = alpha * l_scr[...] + jnp.sum(p, axis=-1, keepdims=True)
    acc_scr[...] = alpha * acc_scr[...] + jnp.einsum(
        'hqk,hkd->hqd', p.astype(mxu_dtype), v,
        preferred_element_type=jnp.float32)                                # (H, tq, dv_h)
    m_scr[...] = m_new

    @pl.when(kv == pl.num_programs(2) - 1)
    def _finalize():
        # Deferred softmax normalization on the small (H, tq, dv_h) accumulator.
        att = acc_scr[...] * pl.reciprocal(l_scr[...], approx=approx_recip)
        # Fold back to the lane-dense (tq, d_v) layout exactly once per q tile.
        att_flat = jnp.concatenate([att[h] for h in range(num_heads)], axis=-1)
        pre = att_flat + x_ref[0] * g_ref[0]                               # (tq, d_v) f32
        y = jnp.dot(pre.astype(mxu_dtype), w_out_ref[...],
                    preferred_element_type=jnp.float32) + b_out_ref[...]
        o_ref[0] = y.astype(o_ref.dtype)


def _fuse_head_weights(w):
    """(num_heads, d_in, d_h) -> (d_in, num_heads*d_h); column block h equals w[h]."""
    n_h, d_in, d_h = w.shape
    return jnp.moveaxis(w, 0, 1).reshape(d_in, n_h * d_h)


def _pick_block_q(seq_q, want):
    want = max(8, (want // 8) * 8)
    if seq_q <= want:
        return seq_q
    for cand in range(want, 7, -8):
        if seq_q % cand == 0:
            return cand
    # TODO(synk): pad the q tail instead of erroring for awkward sequence lengths.
    raise ValueError(f"seq_q={seq_q} has no multiple-of-8 tile <= {want}")


def _pick_block_kv(seq_kv, want):
    if seq_kv <= want:
        return seq_kv
    cand = max(128, (want // 128) * 128)
    while cand >= 128:
        if seq_kv % cand == 0:
            return cand
        cand -= 128
    # TODO(synk): pad + mask the kv tail instead of erroring (needs all-masked-tile care).
    raise ValueError(
        f"seq_kv={seq_kv} is not divisible by any multiple-of-128 tile <= {want}; "
        "the score-matrix lane dim must stay 128-dense")


def multi_head_cross_attention(X, K, V, g, params, *, num_heads,
                               block_q=256, block_kv=512,
                               mxu_dtype=jnp.float32, approx_recip=None):
    """X, K, V, g: (batch, seq, d_in) float32. Returns (batch, seq_q, d_v) float32."""
    if approx_recip is None:
        approx_recip = mxu_dtype != jnp.float32

    batch, seq_q, d_in = X.shape
    seq_kv = K.shape[1]
    wq, bq, wk, bk, wv, bv, wo, bo = params
    assert wq.shape[0] == num_heads
    dk_h = wq.shape[2]
    dv_h = wv.shape[2]
    d_k = num_heads * dk_h
    d_v = num_heads * dv_h
    assert d_v == d_in, "residual `outputs + X * g` requires d_v == d_in"

    scale = 1.0 / math.sqrt(dk_h)
    hi = jax.lax.Precision.HIGHEST

    # --- One-time parameter packing / pre-projection (plain XLA, outside the kernel) ---
    # Head-fused, lane-dense Q weights with the softmax scale folded in.
    w_q = (_fuse_head_weights(wq) * scale).astype(mxu_dtype)        # (d_in, d_k)
    b_q = (bq.reshape(1, d_k) * scale).astype(jnp.float32)          # (1, d_k)
    w_out = wo.astype(mxu_dtype)                                    # (d_v, d_v)
    b_out = bo.reshape(1, d_v).astype(jnp.float32)                  # (1, d_v)

    # K/V projected ONCE per sequence (instead of once per (q-tile, kv-tile) grid step),
    # already in the head-major layout the kernel consumes.
    k_h = (jnp.einsum('bsd,hde->bhse', K, wk, precision=hi)
           + bk[None, :, None, :]).astype(mxu_dtype)                # (B, H, Skv, dk_h)
    v_h = (jnp.einsum('bsd,hde->bhse', V, wv, precision=hi)
           + bv[None, :, None, :]).astype(mxu_dtype)                # (B, H, Skv, dv_h)

    tq = _pick_block_q(seq_q, block_q)
    tkv = _pick_block_kv(seq_kv, block_kv)
    # Give both v7x TensorCores work for batch=1 / short-query shapes.
    if batch * (seq_q // tq) < 2 and tq % 16 == 0:
        tq //= 2
    n_q = seq_q // tq
    n_kv = seq_kv // tkv

    kernel = functools.partial(
        mhca_flash_kernel, num_heads=num_heads, dk_h=dk_h, dv_h=dv_h,
        mxu_dtype=mxu_dtype, approx_recip=approx_recip)

    x_spec = pl.BlockSpec((1, tq, d_in), lambda b, qi, ki: (b, qi, 0))
    k_spec = pl.BlockSpec((1, num_heads, tkv, dk_h), lambda b, qi, ki: (b, 0, ki, 0))
    v_spec = pl.BlockSpec((1, num_heads, tkv, dv_h), lambda b, qi, ki: (b, 0, ki, 0))
    out_spec = pl.BlockSpec((1, tq, d_v), lambda b, qi, ki: (b, qi, 0))

    def const_spec(shape, single_buffer):
        ndim = len(shape)
        index_map = lambda b, qi, ki, _n=ndim: (0,) * _n
        if single_buffer:
            # Constant blocks get no pipelining benefit — don't pay 2x VMEM for them.
            return pl.BlockSpec(shape, index_map,
                                pipeline_mode=pl.Buffered(buffer_count=1))
        return pl.BlockSpec(shape, index_map)

    def run(single_buffer_weights):
        in_specs = [x_spec, x_spec, k_spec, v_spec] + [
            const_spec(a.shape, single_buffer_weights)
            for a in (w_q, b_q, w_out, b_out)]
        return pl.pallas_call(
            kernel,
            out_shape=jax.ShapeDtypeStruct((batch, seq_q, d_v), jnp.float32),
            grid_spec=pltpu.PrefetchScalarGridSpec(
                num_scalar_prefetch=0,
                grid=(batch, n_q, n_kv),
                in_specs=in_specs,
                out_specs=out_spec,
                scratch_shapes=[
                    pltpu.VMEM((num_heads, tq, dk_h), mxu_dtype),     # hoisted q (head-major)
                    pltpu.VMEM((num_heads, tq, 1), jnp.float32),      # running max m
                    pltpu.VMEM((num_heads, tq, 1), jnp.float32),      # running sum l
                    pltpu.VMEM((num_heads, tq, dv_h), jnp.float32),   # head-major accumulator
                ],
            ),
            compiler_params=pltpu.CompilerParams(
                dimension_semantics=("parallel", "parallel", "arbitrary"),
                vmem_limit_bytes=64 * 1024 * 1024),
        )(X, g, k_h, v_h, w_q, b_q, w_out, b_out)

    try:
        return run(True)
    except Exception:
        # TODO(synk): drop this fallback once pl.Buffered(1) single-buffering of constant
        # weight blocks is confirmed on the deployed jax/libtpu build.
        return run(False)


def reference(X, K, V, g, params, *, num_heads):
    """Pure-JAX reference mirroring the PyTorch forward (batch_size > 1 path)."""
    wq, bq, wk, bk, wv, bv, wo, bo = params
    dk_h = wq.shape[2]
    hi = jax.lax.Precision.HIGHEST
    outs = []
    for h in range(num_heads):
        q = jnp.einsum('bsd,de->bse', X, wq[h], precision=hi) + bq[h]
        k = jnp.einsum('bsd,de->bse', K, wk[h], precision=hi) + bk[h]
        v = jnp.einsum('bsd,de->bse', V, wv[h], precision=hi) + bv[h]
        s = jnp.einsum('bqd,bkd->bqk', q, k, precision=hi) / math.sqrt(dk_h)
        w = jax.nn.softmax(s, axis=-1)
        outs.append(jnp.einsum('bqk,bkd->bqd', w, v, precision=hi))
    out = jnp.concatenate(outs, axis=-1)
    out = out + X * g
    return jnp.einsum('bqd,de->bqe', out, wo, precision=hi) + bo[0]


if __name__ == "__main__":
    # Small shapes consistent with the module: d_in == d_v so `outputs + X * g` adds.
    batch, seq = 2, 8
    d_in, d_k, d_v, num_heads = 32, 32, 32, 4
    dk_h, dv_h = d_k // num_heads, d_v // num_heads

    key = jax.random.PRNGKey(0)
    ks = jax.random.split(key, 12)

    X = jax.random.normal(ks[0], (batch, seq, d_in), jnp.float32)
    K = jax.random.normal(ks[1], (batch, seq, d_in), jnp.float32)
    V = jax.random.normal(ks[2], (batch, seq, d_in), jnp.float32)
    g = jax.random.normal(ks[3], (batch, seq, d_in), jnp.float32)

    # Deterministic synthetic parameters (per-head Linear layers stacked on axis 0).
    s_in = 1.0 / math.sqrt(d_in)
    wq = jax.random.uniform(ks[4], (num_heads, d_in, dk_h), jnp.float32, -s_in, s_in)
    bq = jax.random.uniform(ks[5], (num_heads, dk_h), jnp.float32, -s_in, s_in)
    wk = jax.random.uniform(ks[6], (num_heads, d_in, dk_h), jnp.float32, -s_in, s_in)
    bk = jax.random.uniform(ks[7], (num_heads, dk_h), jnp.float32, -s_in, s_in)
    wv = jax.random.uniform(ks[8], (num_heads, d_in, dv_h), jnp.float32, -s_in, s_in)
    bv = jax.random.uniform(ks[9], (num_heads, dv_h), jnp.float32, -s_in, s_in)
    s_o = 1.0 / math.sqrt(d_v)
    wo = jax.random.uniform(ks[10], (d_v, d_v), jnp.float32, -s_o, s_o)
    bo = jax.random.uniform(ks[11], (1, d_v), jnp.float32, -s_o, s_o)

    params = (wq, bq, wk, bk, wv, bv, wo, bo)

    ref = reference(X, K, V, g, params, num_heads=num_heads)

    # Exact-f32 path (tight check).
    out = multi_head_cross_attention(X, K, V, g, params, num_heads=num_heads)
    out = jax.block_until_ready(out)
    assert out.shape == (batch, seq, d_v)
    assert jnp.allclose(out, ref, atol=2e-5, rtol=2e-5), "f32 kernel mismatch vs reference"

    # bf16-MXU path (v6e/v7x fast path): bf16 operands + approx reciprocal, loose check.
    out_bf16 = multi_head_cross_attention(X, K, V, g, params, num_heads=num_heads,
                                          mxu_dtype=jnp.bfloat16)
    out_bf16 = jax.block_until_ready(out_bf16)
    assert out_bf16.shape == (batch, seq, d_v)
    assert float(jnp.max(jnp.abs(out_bf16 - ref))) < 0.2, "bf16 kernel drifted too far"

    print("KERNEL_OK")
</pallas_src>

<mosaic_0001>
module attributes {stable_mosaic.version = 11 : i64} {
  func.func @mhca_flash_kernel(%arg0: i32, %arg1: i32, %arg2: i32, %arg3: memref<1x8x32xf32, #tpu.memory_space<vmem>>, %arg4: memref<1x8x32xf32, #tpu.memory_space<vmem>>, %arg5: memref<1x4x8x8xf32, #tpu.memory_space<vmem>>, %arg6: memref<1x4x8x8xf32, #tpu.memory_space<vmem>>, %arg7: memref<32x32xf32, #tpu.memory_space<vmem>>, %arg8: memref<1x32xf32, #tpu.memory_space<vmem>>, %arg9: memref<32x32xf32, #tpu.memory_space<vmem>>, %arg10: memref<1x32xf32, #tpu.memory_space<vmem>>, %arg11: memref<1x8x32xf32, #tpu.memory_space<vmem>>, %arg12: memref<4x8x8xf32, #tpu.memory_space<vmem>>, %arg13: memref<4x8x1xf32, #tpu.memory_space<vmem>>, %arg14: memref<4x8x1xf32, #tpu.memory_space<vmem>>, %arg15: memref<4x8x8xf32, #tpu.memory_space<vmem>>) attributes {dimension_semantics = [#tpu.dimension_semantics<parallel>, #tpu.dimension_semantics<parallel>, #tpu.dimension_semantics<arbitrary>], iteration_bounds = array<i64: 2, 1, 1>, scalar_prefetch = 0 : i64, scratch_operands = 4 : i64, tpu.core_type = #tpu.core_type<tc>, window_params = [{transform_indices = @transform_0, window_bounds = array<i64: 1, 8, 32>}, {transform_indices = @transform_1, window_bounds = array<i64: 1, 8, 32>}, {transform_indices = @transform_2, window_bounds = array<i64: 1, 4, 8, 8>}, {transform_indices = @transform_3, window_bounds = array<i64: 1, 4, 8, 8>}, {pipeline_mode = #tpu.pipeline_mode<synchronous>, transform_indices = @transform_4, window_bounds = array<i64: 32, 32>}, {pipeline_mode = #tpu.pipeline_mode<synchronous>, transform_indices = @transform_5, window_bounds = array<i64: 1, 32>}, {pipeline_mode = #tpu.pipeline_mode<synchronous>, transform_indices = @transform_6, window_bounds = array<i64: 32, 32>}, {pipeline_mode = #tpu.pipeline_mode<synchronous>, transform_indices = @transform_7, window_bounds = array<i64: 1, 32>}, {transform_indices = @transform_8, window_bounds = array<i64: 1, 8, 32>}]} {
    %c0_i32 = arith.constant 0 : i32
    %0 = arith.cmpi eq, %arg2, %c0_i32 : i32
    %1 = arith.extui %0 : i1 to i32
    %c0_i32_0 = arith.constant 0 : i32
    %2 = arith.cmpi ne, %1, %c0_i32_0 : i32
    scf.if %2 {
      %c0_34 = arith.constant 0 : index
      %c0_35 = arith.constant 0 : index
      %c0_36 = arith.constant 0 : index
      %34 = vector.load %arg3[%c0_34, %c0_35, %c0_36] : memref<1x8x32xf32, #tpu.memory_space<vmem>>, vector<1x8x32xf32>
      %35 = vector.shape_cast %34 : vector<1x8x32xf32> to vector<8x32xf32>
      %c0_37 = arith.constant 0 : index
      %c0_38 = arith.constant 0 : index
      %36 = vector.load %arg7[%c0_37, %c0_38] : memref<32x32xf32, #tpu.memory_space<vmem>>, vector<32x32xf32>
      %cst_39 = arith.constant dense<0.000000e+00> : vector<8x32xf32>
      %37 = tpu.matmul %35, %36, %cst_39 {dimension_numbers = #tpu.dot_dimension_numbers<[1], [0], [0], [1], [0, 0, 1, 1], [], []>} : vector<8x32xf32>, vector<32x32xf32>, vector<8x32xf32> -> vector<8x32xf32>
      %c0_40 = arith.constant 0 : index
      %c0_41 = arith.constant 0 : index
      %38 = vector.load %arg8[%c0_40, %c0_41] : memref<1x32xf32, #tpu.memory_space<vmem>>, vector<1x32xf32>
      %39 = vector.broadcast %38 : vector<1x32xf32> to vector<8x32xf32>
      %40 = arith.addf %37, %39 : vector<8x32xf32>
      %41 = vector.extract_strided_slice %40 {offsets = [0, 0], sizes = [8, 8], strides = [1, 1]} : vector<8x32xf32> to vector<8x8xf32>
      %c0_42 = arith.constant 0 : index
      %c0_43 = arith.constant 0 : index
      %c0_44 = arith.constant 0 : index
      %42 = vector.load %arg12[%c0_42, %c0_43, %c0_44] : memref<4x8x8xf32, #tpu.memory_space<vmem>>, vector<1x8x8xf32>
      %43 = vector.shape_cast %42 : vector<1x8x8xf32> to vector<8x8xf32>
      %44 = vector.shape_cast %41 : vector<8x8xf32> to vector<1x8x8xf32>
      tpu.vector_store %arg12[%c0_42, %c0_43, %c0_44], %44 {strides = array<i32>} : memref<4x8x8xf32, #tpu.memory_space<vmem>>, vector<1x8x8xf32>,
      %45 = vector.extract_strided_slice %40 {offsets = [0, 8], sizes = [8, 8], strides = [1, 1]} : vector<8x32xf32> to vector<8x8xf32>
      %c1 = arith.constant 1 : index
      %c0_45 = arith.constant 0 : index
      %c0_46 = arith.constant 0 : index
      %46 = vector.load %arg12[%c1, %c0_45, %c0_46] : memref<4x8x8xf32, #tpu.memory_space<vmem>>, vector<1x8x8xf32>
      %47 = vector.shape_cast %46 : vector<1x8x8xf32> to vector<8x8xf32>
      %48 = vector.shape_cast %45 : vector<8x8xf32> to vector<1x8x8xf32>
      tpu.vector_store %arg12[%c1, %c0_45, %c0_46], %48 {strides = array<i32>} : memref<4x8x8xf32, #tpu.memory_space<vmem>>, vector<1x8x8xf32>,
      %49 = vector.extract_strided_slice %40 {offsets = [0, 16], sizes = [8, 8], strides = [1, 1]} : vector<8x32xf32> to vector<8x8xf32>
      %c2 = arith.constant 2 : index
      %c0_47 = arith.constant 0 : index
      %c0_48 = arith.constant 0 : index
      %50 = vector.load %arg12[%c2, %c0_47, %c0_48] : memref<4x8x8xf32, #tpu.memory_space<vmem>>, vector<1x8x8xf32>
      %51 = vector.shape_cast %50 : vector<1x8x8xf32> to vector<8x8xf32>
      %52 = vector.shape_cast %49 : vector<8x8xf32> to vector<1x8x8xf32>
      tpu.vector_store %arg12[%c2, %c0_47, %c0_48], %52 {strides = array<i32>} : memref<4x8x8xf32, #tpu.memory_space<vmem>>, vector<1x8x8xf32>,
      %53 = vector.extract_strided_slice %40 {offsets = [0, 24], sizes = [8, 8], strides = [1, 1]} : vector<8x32xf32> to vector<8x8xf32>
      %c3 = arith.constant 3 : index
      %c0_49 = arith.constant 0 : index
      %c0_50 = arith.constant 0 : index
      %54 = vector.load %arg12[%c3, %c0_49, %c0_50] : memref<4x8x8xf32, #tpu.memory_space<vmem>>, vector<1x8x8xf32>
      %55 = vector.shape_cast %54 : vector<1x8x8xf32> to vector<8x8xf32>
      %56 = vector.shape_cast %53 : vector<8x8xf32> to vector<1x8x8xf32>
      tpu.vector_store %arg12[%c3, %c0_49, %c0_50], %56 {strides = array<i32>} : memref<4x8x8xf32, #tpu.memory_space<vmem>>, vector<1x8x8xf32>,
      %cst_51 = arith.constant 0xFF800000 : f32
      %57 = vector.broadcast %cst_51 : f32 to vector<4x8x1xf32>
      %c0_52 = arith.constant 0 : index
      %c0_53 = arith.constant 0 : index
      %c0_54 = arith.constant 0 : index
      %58 = vector.load %arg13[%c0_52, %c0_53, %c0_54] : memref<4x8x1xf32, #tpu.memory_space<vmem>>, vector<4x8x1xf32>
      tpu.vector_store %arg13[%c0_52, %c0_53, %c0_54], %57 {strides = array<i32>} : memref<4x8x1xf32, #tpu.memory_space<vmem>>, vector<4x8x1xf32>,
      %cst_55 = arith.constant 0.000000e+00 : f32
      %59 = vector.broadcast %cst_55 : f32 to vector<4x8x1xf32>
      %c0_56 = arith.constant 0 : index
      %c0_57 = arith.constant 0 : index
      %c0_58 = arith.constant 0 : index
      %60 = vector.load %arg14[%c0_56, %c0_57, %c0_58] : memref<4x8x1xf32, #tpu.memory_space<vmem>>, vector<4x8x1xf32>
      tpu.vector_store %arg14[%c0_56, %c0_57, %c0_58], %59 {strides = array<i32>} : memref<4x8x1xf32, #tpu.memory_space<vmem>>, vector<4x8x1xf32>,
      %cst_59 = arith.constant 0.000000e+00 : f32
      %61 = vector.broadcast %cst_59 : f32 to vector<4x8x8xf32>
      %c0_60 = arith.constant 0 : index
      %c0_61 = arith.constant 0 : index
      %c0_62 = arith.constant 0 : index
      %62 = vector.load %arg15[%c0_60, %c0_61, %c0_62] : memref<4x8x8xf32, #tpu.memory_space<vmem>>, vector<4x8x8xf32>
      tpu.vector_store %arg15[%c0_60, %c0_61, %c0_62], %61 {strides = array<i32>} : memref<4x8x8xf32, #tpu.memory_space<vmem>>, vector<4x8x8xf32>,
    } else {
    }
    %c0 = arith.constant 0 : index
    %c0_1 = arith.constant 0 : index
    %c0_2 = arith.constant 0 : index
    %3 = vector.load %arg12[%c0, %c0_1, %c0_2] : memref<4x8x8xf32, #tpu.memory_space<vmem>>, vector<4x8x8xf32>
    %c0_3 = arith.constant 0 : index
    %c0_4 = arith.constant 0 : index
    %c0_5 = arith.constant 0 : index
    %c0_6 = arith.constant 0 : index
    %4 = vector.load %arg5[%c0_3, %c0_4, %c0_5, %c0_6] : memref<1x4x8x8xf32, #tpu.memory_space<vmem>>, vector<1x4x8x8xf32>
    %5 = vector.shape_cast %4 : vector<1x4x8x8xf32> to vector<4x8x8xf32>
    %c0_7 = arith.constant 0 : index
    %c0_8 = arith.constant 0 : index
    %c0_9 = arith.constant 0 : index
    %c0_10 = arith.constant 0 : index
    %6 = vector.load %arg6[%c0_7, %c0_8, %c0_9, %c0_10] : memref<1x4x8x8xf32, #tpu.memory_space<vmem>>, vector<1x4x8x8xf32>
    %7 = vector.shape_cast %6 : vector<1x4x8x8xf32> to vector<4x8x8xf32>
    "tpu.trace_start"() <{level = 10 : i32, message = "hqd,hkd->hqk"}> : () -> ()
    %cst = arith.constant dense<0.000000e+00> : vector<4x8x8xf32>
    %8 = tpu.matmul %3, %5, %cst {dimension_numbers = #tpu.dot_dimension_numbers<[2], [2], [1], [1], [0, 0, 0, 1, 1, 1], [0], [0]>} : vector<4x8x8xf32>, vector<4x8x8xf32>, vector<4x8x8xf32> -> vector<4x8x8xf32>
    "tpu.trace_stop"() : () -> ()
    %c0_11 = arith.constant 0 : index
    %c0_12 = arith.constant 0 : index
    %c0_13 = arith.constant 0 : index
    %9 = vector.load %arg13[%c0_11, %c0_12, %c0_13] : memref<4x8x1xf32, #tpu.memory_space<vmem>>, vector<4x8x1xf32>
    %cst_14 = arith.constant dense<0xFF800000> : vector<4x8xf32>
    %10 = vector.multi_reduction <maximumf>, %8, %cst_14 [2] : vector<4x8x8xf32> to vector<4x8xf32>
    %11 = vector.shape_cast %10 : vector<4x8xf32> to vector<4x8x1xf32>
    %12 = arith.maximumf %9, %11 : vector<4x8x1xf32>
    %13 = arith.subf %9, %12 : vector<4x8x1xf32>
    %14 = math.exp %13 : vector<4x8x1xf32>
    %15 = vector.broadcast %12 : vector<4x8x1xf32> to vector<4x8x8xf32>
    %16 = arith.subf %8, %15 : vector<4x8x8xf32>
    %17 = math.exp %16 : vector<4x8x8xf32>
    %c0_15 = arith.constant 0 : index
    %c0_16 = arith.constant 0 : index
    %c0_17 = arith.constant 0 : index
    %18 = vector.load %arg14[%c0_15, %c0_16, %c0_17] : memref<4x8x1xf32, #tpu.memory_space<vmem>>, vector<4x8x1xf32>
    %19 = arith.mulf %14, %18 : vector<4x8x1xf32>
    %cst_18 = arith.constant dense<0.000000e+00> : vector<4x8xf32>
    %20 = vector.multi_reduction <add>, %17, %cst_18 [2] : vector<4x8x8xf32> to vector<4x8xf32>
    %21 = vector.shape_cast %20 : vector<4x8xf32> to vector<4x8x1xf32>
    %22 = arith.addf %19, %21 : vector<4x8x1xf32>
    %c0_19 = arith.constant 0 : index
    %c0_20 = arith.constant 0 : index
    %c0_21 = arith.constant 0 : index
    %23 = vector.load %arg14[%c0_19, %c0_20, %c0_21] : memref<4x8x1xf32, #tpu.memory_space<vmem>>, vector<4x8x1xf32>
    tpu.vector_store %arg14[%c0_19, %c0_20, %c0_21], %22 {strides = array<i32>} : memref<4x8x1xf32, #tpu.memory_space<vmem>>, vector<4x8x1xf32>,
    %c0_22 = arith.constant 0 : index
    %c0_23 = arith.constant 0 : index
    %c0_24 = arith.constant 0 : index
    %24 = vector.load %arg15[%c0_22, %c0_23, %c0_24] : memref<4x8x8xf32, #tpu.memory_space<vmem>>, vector<4x8x8xf32>
    %25 = vector.broadcast %14 : vector<4x8x1xf32> to vector<4x8x8xf32>
    %26 = arith.mulf %25, %24 : vector<4x8x8xf32>
    "tpu.trace_start"() <{level = 10 : i32, message = "hqk,hkd->hqd"}> : () -> ()
    %cst_25 = arith.constant dense<0.000000e+00> : vector<4x8x8xf32>
    %27 = tpu.matmul %17, %7, %cst_25 {dimension_numbers = #tpu.dot_dimension_numbers<[2], [1], [1], [2], [0, 0, 0, 1, 1, 2], [0], [0]>} : vector<4x8x8xf32>, vector<4x8x8xf32>, vector<4x8x8xf32> -> vector<4x8x8xf32>
    "tpu.trace_stop"() : () -> ()
    %28 = arith.addf %26, %27 : vector<4x8x8xf32>
    %c0_26 = arith.constant 0 : index
    %c0_27 = arith.constant 0 : index
    %c0_28 = arith.constant 0 : index
    %29 = vector.load %arg15[%c0_26, %c0_27, %c0_28] : memref<4x8x8xf32, #tpu.memory_space<vmem>>, vector<4x8x8xf32>
    tpu.vector_store %arg15[%c0_26, %c0_27, %c0_28], %28 {strides = array<i32>} : memref<4x8x8xf32, #tpu.memory_space<vmem>>, vector<4x8x8xf32>,
    %c0_29 = arith.constant 0 : index
    %c0_30 = arith.constant 0 : index
    %c0_31 = arith.constant 0 : index
    %30 = vector.load %arg13[%c0_29, %c0_30, %c0_31] : memref<4x8x1xf32, #tpu.memory_space<vmem>>, vector<4x8x1xf32>
    tpu.vector_store %arg13[%c0_29, %c0_30, %c0_31], %12 {strides = array<i32>} : memref<4x8x1xf32, #tpu.memory_space<vmem>>, vector<4x8x1xf32>,
    %c0_i32_32 = arith.constant 0 : i32
    %31 = arith.cmpi eq, %arg2, %c0_i32_32 : i32
    %32 = arith.extui %31 : i1 to i32
    %c0_i32_33 = arith.constant 0 : i32
    %33 = arith.cmpi ne, %32, %c0_i32_33 : i32
    scf.if %33 {
      %c0_34 = arith.constant 0 : index
      %c0_35 = arith.constant 0 : index
      %c0_36 = arith.constant 0 : index
      %34 = vector.load %arg15[%c0_34, %c0_35, %c0_36] : memref<4x8x8xf32, #tpu.memory_space<vmem>>, vector<4x8x8xf32>
      %c0_37 = arith.constant 0 : index
      %c0_38 = arith.constant 0 : index
      %c0_39 = arith.constant 0 : index
      %35 = vector.load %arg14[%c0_37, %c0_38, %c0_39] : memref<4x8x1xf32, #tpu.memory_space<vmem>>, vector<4x8x1xf32>
      %36 = tpu.reciprocal %35 : vector<4x8x1xf32> -> vector<4x8x1xf32>
      %37 = vector.broadcast %36 : vector<4x8x1xf32> to vector<4x8x8xf32>
      %38 = arith.mulf %34, %37 : vector<4x8x8xf32>
      %39 = vector.extract_strided_slice %38 {offsets = [0, 0, 0], sizes = [1, 8, 8], strides = [1, 1, 1]} : vector<4x8x8xf32> to vector<1x8x8xf32>
      %40 = vector.shape_cast %39 : vector<1x8x8xf32> to vector<8x8xf32>
      %41 = vector.extract_strided_slice %38 {offsets = [1, 0, 0], sizes = [1, 8, 8], strides = [1, 1, 1]} : vector<4x8x8xf32> to vector<1x8x8xf32>
      %42 = vector.shape_cast %41 : vector<1x8x8xf32> to vector<8x8xf32>
      %43 = vector.extract_strided_slice %38 {offsets = [2, 0, 0], sizes = [1, 8, 8], strides = [1, 1, 1]} : vector<4x8x8xf32> to vector<1x8x8xf32>
      %44 = vector.shape_cast %43 : vector<1x8x8xf32> to vector<8x8xf32>
      %45 = vector.extract_strided_slice %38 {offsets = [3, 0, 0], sizes = [1, 8, 8], strides = [1, 1, 1]} : vector<4x8x8xf32> to vector<1x8x8xf32>
      %46 = vector.shape_cast %45 : vector<1x8x8xf32> to vector<8x8xf32>
      %47 = tpu.concatenate %40, %42, %44, %46 in 1 : vector<8x8xf32>, vector<8x8xf32>, vector<8x8xf32>, vector<8x8xf32> -> vector<8x32xf32>
      %c0_40 = arith.constant 0 : index
      %c0_41 = arith.constant 0 : index
      %c0_42 = arith.constant 0 : index
      %48 = vector.load %arg3[%c0_40, %c0_41, %c0_42] : memref<1x8x32xf32, #tpu.memory_space<vmem>>, vector<1x8x32xf32>
      %49 = vector.shape_cast %48 : vector<1x8x32xf32> to vector<8x32xf32>
      %c0_43 = arith.constant 0 : index
      %c0_44 = arith.constant 0 : index
      %c0_45 = arith.constant 0 : index
      %50 = vector.load %arg4[%c0_43, %c0_44, %c0_45] : memref<1x8x32xf32, #tpu.memory_space<vmem>>, vector<1x8x32xf32>
      %51 = vector.shape_cast %50 : vector<1x8x32xf32> to vector<8x32xf32>
      %52 = arith.mulf %49, %51 : vector<8x32xf32>
      %53 = arith.addf %47, %52 : vector<8x32xf32>
      %c0_46 = arith.constant 0 : index
      %c0_47 = arith.constant 0 : index
      %54 = vector.load %arg9[%c0_46, %c0_47] : memref<32x32xf32, #tpu.memory_space<vmem>>, vector<32x32xf32>
      %cst_48 = arith.constant dense<0.000000e+00> : vector<8x32xf32>
      %55 = tpu.matmul %53, %54, %cst_48 {dimension_numbers = #tpu.dot_dimension_numbers<[1], [0], [0], [1], [0, 0, 1, 1], [], []>} : vector<8x32xf32>, vector<32x32xf32>, vector<8x32xf32> -> vector<8x32xf32>
      %c0_49 = arith.constant 0 : index
      %c0_50 = arith.constant 0 : index
      %56 = vector.load %arg10[%c0_49, %c0_50] : memref<1x32xf32, #tpu.memory_space<vmem>>, vector<1x32xf32>
      %57 = vector.broadcast %56 : vector<1x32xf32> to vector<8x32xf32>
      %58 = arith.addf %55, %57 : vector<8x32xf32>
      %c0_51 = arith.constant 0 : index
      %c0_52 = arith.constant 0 : index
      %c0_53 = arith.constant 0 : index
      %59 = vector.load %arg11[%c0_51, %c0_52, %c0_53] : memref<1x8x32xf32, #tpu.memory_space<vmem>>, vector<1x8x32xf32>
      %60 = vector.shape_cast %59 : vector<1x8x32xf32> to vector<8x32xf32>
      %61 = vector.shape_cast %58 : vector<8x32xf32> to vector<1x8x32xf32>
      tpu.vector_store %arg11[%c0_51, %c0_52, %c0_53], %61 {strides = array<i32>} : memref<1x8x32xf32, #tpu.memory_space<vmem>>, vector<1x8x32xf32>,
    } else {
    }
    return
  }
  func.func @transform_0(%arg0: i32, %arg1: i32, %arg2: i32) -> (i32, i32, i32) {
    %c0_i32 = arith.constant 0 : i32
    %c0_i32_0 = arith.constant 0 : i32
    return %arg0, %arg1, %c0_i32 : i32, i32, i32
  }
  func.func @transform_1(%arg0: i32, %arg1: i32, %arg2: i32) -> (i32, i32, i32) {
    %c0_i32 = arith.constant 0 : i32
    %c0_i32_0 = arith.constant 0 : i32
    return %arg0, %arg1, %c0_i32 : i32, i32, i32
  }
  func.func @transform_2(%arg0: i32, %arg1: i32, %arg2: i32) -> (i32, i32, i32, i32) {
    %c0_i32 = arith.constant 0 : i32
    %c0_i32_0 = arith.constant 0 : i32
    %c0_i32_1 = arith.constant 0 : i32
    return %arg0, %c0_i32, %arg2, %c0_i32_0 : i32, i32, i32, i32
  }
  func.func @transform_3(%arg0: i32, %arg1: i32, %arg2: i32) -> (i32, i32, i32, i32) {
    %c0_i32 = arith.constant 0 : i32
    %c0_i32_0 = arith.constant 0 : i32
    %c0_i32_1 = arith.constant 0 : i32
    return %arg0, %c0_i32, %arg2, %c0_i32_0 : i32, i32, i32, i32
  }
  func.func @transform_4(%arg0: i32, %arg1: i32, %arg2: i32) -> (i32, i32) {
    %c0_i32 = arith.constant 0 : i32
    %c0_i32_0 = arith.constant 0 : i32
    %c0_i32_1 = arith.constant 0 : i32
    return %c0_i32, %c0_i32_0 : i32, i32
  }
  func.func @transform_5(%arg0: i32, %arg1: i32, %arg2: i32) -> (i32, i32) {
    %c0_i32 = arith.constant 0 : i32
    %c0_i32_0 = arith.constant 0 : i32
    %c0_i32_1 = arith.constant 0 : i32
    return %c0_i32, %c0_i32_0 : i32, i32
  }
  func.func @transform_6(%arg0: i32, %arg1: i32, %arg2: i32) -> (i32, i32) {
    %c0_i32 = arith.constant 0 : i32
    %c0_i32_0 = arith.constant 0 : i32
    %c0_i32_1 = arith.constant 0 : i32
    return %c0_i32, %c0_i32_0 : i32, i32
  }
  func.func @transform_7(%arg0: i32, %arg1: i32, %arg2: i32) -> (i32, i32) {
    %c0_i32 = arith.constant 0 : i32
    %c0_i32_0 = arith.constant 0 : i32
    %c0_i32_1 = arith.constant 0 : i32
    return %c0_i32, %c0_i32_0 : i32, i32
  }
  func.func @transform_8(%arg0: i32, %arg1: i32, %arg2: i32) -> (i32, i32, i32) {
    %c0_i32 = arith.constant 0 : i32
    %c0_i32_0 = arith.constant 0 : i32
    return %arg0, %arg1, %c0_i32 : i32, i32, i32
  }
}

module attributes {stable_mosaic.version = 11 : i64} {
  func.func @mhca_flash_kernel(%arg0: i32, %arg1: i32, %arg2: i32, %arg3: memref<1x8x32xf32, #tpu.memory_space<vmem>>, %arg4: memref<1x8x32xf32, #tpu.memory_space<vmem>>, %arg5: memref<1x4x8x8xf32, #tpu.memory_space<vmem>>, %arg6: memref<1x4x8x8xf32, #tpu.memory_space<vmem>>, %arg7: memref<32x32xf32, #tpu.memory_space<vmem>>, %arg8: memref<1x32xf32, #tpu.memory_space<vmem>>, %arg9: memref<32x32xf32, #tpu.memory_space<vmem>>, %arg10: memref<1x32xf32, #tpu.memory_space<vmem>>, %arg11: memref<1x8x32xf32, #tpu.memory_space<vmem>>, %arg12: memref<4x8x8xf32, #tpu.memory_space<vmem>>, %arg13: memref<4x8x1xf32, #tpu.memory_space<vmem>>, %arg14: memref<4x8x1xf32, #tpu.memory_space<vmem>>, %arg15: memref<4x8x8xf32, #tpu.memory_space<vmem>>) attributes {dimension_semantics = [#tpu.dimension_semantics<parallel>, #tpu.dimension_semantics<parallel>, #tpu.dimension_semantics<arbitrary>], iteration_bounds = array<i64: 2, 1, 1>, scalar_prefetch = 0 : i64, scratch_operands = 4 : i64, tpu.core_type = #tpu.core_type<tc>, window_params = [{transform_indices = @transform_0, window_bounds = array<i64: 1, 8, 32>}, {transform_indices = @transform_1, window_bounds = array<i64: 1, 8, 32>}, {transform_indices = @transform_2, window_bounds = array<i64: 1, 4, 8, 8>}, {transform_indices = @transform_3, window_bounds = array<i64: 1, 4, 8, 8>}, {pipeline_mode = #tpu.pipeline_mode<synchronous>, transform_indices = @transform_4, window_bounds = array<i64: 32, 32>}, {pipeline_mode = #tpu.pipeline_mode<synchronous>, transform_indices = @transform_5, window_bounds = array<i64: 1, 32>}, {pipeline_mode = #tpu.pipeline_mode<synchronous>, transform_indices = @transform_6, window_bounds = array<i64: 32, 32>}, {pipeline_mode = #tpu.pipeline_mode<synchronous>, transform_indices = @transform_7, window_bounds = array<i64: 1, 32>}, {transform_indices = @transform_8, window_bounds = array<i64: 1, 8, 32>}]} {
    %c0_i32 = arith.constant 0 : i32
    %0 = arith.cmpi eq, %arg2, %c0_i32 : i32
    %1 = arith.extui %0 : i1 to i32
    %c0_i32_0 = arith.constant 0 : i32
    %2 = arith.cmpi ne, %1, %c0_i32_0 : i32
    scf.if %2 {
      %c0_34 = arith.constant 0 : index
      %c0_35 = arith.constant 0 : index
      %c0_36 = arith.constant 0 : index
      %34 = vector.load %arg3[%c0_34, %c0_35, %c0_36] : memref<1x8x32xf32, #tpu.memory_space<vmem>>, vector<1x8x32xf32>
      %35 = vector.shape_cast %34 : vector<1x8x32xf32> to vector<8x32xf32>
      %c0_37 = arith.constant 0 : index
      %c0_38 = arith.constant 0 : index
      %36 = vector.load %arg7[%c0_37, %c0_38] : memref<32x32xf32, #tpu.memory_space<vmem>>, vector<32x32xf32>
      %cst_39 = arith.constant dense<0.000000e+00> : vector<8x32xf32>
      %37 = tpu.matmul %35, %36, %cst_39 {dimension_numbers = #tpu.dot_dimension_numbers<[1], [0], [0], [1], [0, 0, 1, 1], [], []>} : vector<8x32xf32>, vector<32x32xf32>, vector<8x32xf32> -> vector<8x32xf32>
      %c0_40 = arith.constant 0 : index
      %c0_41 = arith.constant 0 : index
      %38 = vector.load %arg8[%c0_40, %c0_41] : memref<1x32xf32, #tpu.memory_space<vmem>>, vector<1x32xf32>
      %39 = vector.broadcast %38 : vector<1x32xf32> to vector<8x32xf32>
      %40 = arith.addf %37, %39 : vector<8x32xf32>
      %41 = vector.extract_strided_slice %40 {offsets = [0, 0], sizes = [8, 8], strides = [1, 1]} : vector<8x32xf32> to vector<8x8xf32>
      %c0_42 = arith.constant 0 : index
      %c0_43 = arith.constant 0 : index
      %c0_44 = arith.constant 0 : index
      %42 = vector.load %arg12[%c0_42, %c0_43, %c0_44] : memref<4x8x8xf32, #tpu.memory_space<vmem>>, vector<1x8x8xf32>
      %43 = vector.shape_cast %42 : vector<1x8x8xf32> to vector<8x8xf32>
      %44 = vector.shape_cast %41 : vector<8x8xf32> to vector<1x8x8xf32>
      tpu.vector_store %arg12[%c0_42, %c0_43, %c0_44], %44 {strides = array<i32>} : memref<4x8x8xf32, #tpu.memory_space<vmem>>, vector<1x8x8xf32>,
      %45 = vector.extract_strided_slice %40 {offsets = [0, 8], sizes = [8, 8], strides = [1, 1]} : vector<8x32xf32> to vector<8x8xf32>
      %c1 = arith.constant 1 : index
      %c0_45 = arith.constant 0 : index
      %c0_46 = arith.constant 0 : index
      %46 = vector.load %arg12[%c1, %c0_45, %c0_46] : memref<4x8x8xf32, #tpu.memory_space<vmem>>, vector<1x8x8xf32>
      %47 = vector.shape_cast %46 : vector<1x8x8xf32> to vector<8x8xf32>
      %48 = vector.shape_cast %45 : vector<8x8xf32> to vector<1x8x8xf32>
      tpu.vector_store %arg12[%c1, %c0_45, %c0_46], %48 {strides = array<i32>} : memref<4x8x8xf32, #tpu.memory_space<vmem>>, vector<1x8x8xf32>,
      %49 = vector.extract_strided_slice %40 {offsets = [0, 16], sizes = [8, 8], strides = [1, 1]} : vector<8x32xf32> to vector<8x8xf32>
      %c2 = arith.constant 2 : index
      %c0_47 = arith.constant 0 : index
      %c0_48 = arith.constant 0 : index
      %50 = vector.load %arg12[%c2, %c0_47, %c0_48] : memref<4x8x8xf32, #tpu.memory_space<vmem>>, vector<1x8x8xf32>
      %51 = vector.shape_cast %50 : vector<1x8x8xf32> to vector<8x8xf32>
      %52 = vector.shape_cast %49 : vector<8x8xf32> to vector<1x8x8xf32>
      tpu.vector_store %arg12[%c2, %c0_47, %c0_48], %52 {strides = array<i32>} : memref<4x8x8xf32, #tpu.memory_space<vmem>>, vector<1x8x8xf32>,
      %53 = vector.extract_strided_slice %40 {offsets = [0, 24], sizes = [8, 8], strides = [1, 1]} : vector<8x32xf32> to vector<8x8xf32>
      %c3 = arith.constant 3 : index
      %c0_49 = arith.constant 0 : index
      %c0_50 = arith.constant 0 : index
      %54 = vector.load %arg12[%c3, %c0_49, %c0_50] : memref<4x8x8xf32, #tpu.memory_space<vmem>>, vector<1x8x8xf32>
      %55 = vector.shape_cast %54 : vector<1x8x8xf32> to vector<8x8xf32>
      %56 = vector.shape_cast %53 : vector<8x8xf32> to vector<1x8x8xf32>
      tpu.vector_store %arg12[%c3, %c0_49, %c0_50], %56 {strides = array<i32>} : memref<4x8x8xf32, #tpu.memory_space<vmem>>, vector<1x8x8xf32>,
      %cst_51 = arith.constant 0xFF800000 : f32
      %57 = vector.broadcast %cst_51 : f32 to vector<4x8x1xf32>
      %c0_52 = arith.constant 0 : index
      %c0_53 = arith.constant 0 : index
      %c0_54 = arith.constant 0 : index
      %58 = vector.load %arg13[%c0_52, %c0_53, %c0_54] : memref<4x8x1xf32, #tpu.memory_space<vmem>>, vector<4x8x1xf32>
      tpu.vector_store %arg13[%c0_52, %c0_53, %c0_54], %57 {strides = array<i32>} : memref<4x8x1xf32, #tpu.memory_space<vmem>>, vector<4x8x1xf32>,
      %cst_55 = arith.constant 0.000000e+00 : f32
      %59 = vector.broadcast %cst_55 : f32 to vector<4x8x1xf32>
      %c0_56 = arith.constant 0 : index
      %c0_57 = arith.constant 0 : index
      %c0_58 = arith.constant 0 : index
      %60 = vector.load %arg14[%c0_56, %c0_57, %c0_58] : memref<4x8x1xf32, #tpu.memory_space<vmem>>, vector<4x8x1xf32>
      tpu.vector_store %arg14[%c0_56, %c0_57, %c0_58], %59 {strides = array<i32>} : memref<4x8x1xf32, #tpu.memory_space<vmem>>, vector<4x8x1xf32>,
      %cst_59 = arith.constant 0.000000e+00 : f32
      %61 = vector.broadcast %cst_59 : f32 to vector<4x8x8xf32>
      %c0_60 = arith.constant 0 : index
      %c0_61 = arith.constant 0 : index
      %c0_62 = arith.constant 0 : index
      %62 = vector.load %arg15[%c0_60, %c0_61, %c0_62] : memref<4x8x8xf32, #tpu.memory_space<vmem>>, vector<4x8x8xf32>
      tpu.vector_store %arg15[%c0_60, %c0_61, %c0_62], %61 {strides = array<i32>} : memref<4x8x8xf32, #tpu.memory_space<vmem>>, vector<4x8x8xf32>,
    } else {
    }
    %c0 = arith.constant 0 : index
    %c0_1 = arith.constant 0 : index
    %c0_2 = arith.constant 0 : index
    %3 = vector.load %arg12[%c0, %c0_1, %c0_2] : memref<4x8x8xf32, #tpu.memory_space<vmem>>, vector<4x8x8xf32>
    %c0_3 = arith.constant 0 : index
    %c0_4 = arith.constant 0 : index
    %c0_5 = arith.constant 0 : index
    %c0_6 = arith.constant 0 : index
    %4 = vector.load %arg5[%c0_3, %c0_4, %c0_5, %c0_6] : memref<1x4x8x8xf32, #tpu.memory_space<vmem>>, vector<1x4x8x8xf32>
    %5 = vector.shape_cast %4 : vector<1x4x8x8xf32> to vector<4x8x8xf32>
    %c0_7 = arith.constant 0 : index
    %c0_8 = arith.constant 0 : index
    %c0_9 = arith.constant 0 : index
    %c0_10 = arith.constant 0 : index
    %6 = vector.load %arg6[%c0_7, %c0_8, %c0_9, %c0_10] : memref<1x4x8x8xf32, #tpu.memory_space<vmem>>, vector<1x4x8x8xf32>
    %7 = vector.shape_cast %6 : vector<1x4x8x8xf32> to vector<4x8x8xf32>
    "tpu.trace_start"() <{level = 10 : i32, message = "hqd,hkd->hqk"}> : () -> ()
    %cst = arith.constant dense<0.000000e+00> : vector<4x8x8xf32>
    %8 = tpu.matmul %3, %5, %cst {dimension_numbers = #tpu.dot_dimension_numbers<[2], [2], [1], [1], [0, 0, 0, 1, 1, 1], [0], [0]>} : vector<4x8x8xf32>, vector<4x8x8xf32>, vector<4x8x8xf32> -> vector<4x8x8xf32>
    "tpu.trace_stop"() : () -> ()
    %c0_11 = arith.constant 0 : index
    %c0_12 = arith.constant 0 : index
    %c0_13 = arith.constant 0 : index
    %9 = vector.load %arg13[%c0_11, %c0_12, %c0_13] : memref<4x8x1xf32, #tpu.memory_space<vmem>>, vector<4x8x1xf32>
    %cst_14 = arith.constant dense<0xFF800000> : vector<4x8xf32>
    %10 = vector.multi_reduction <maximumf>, %8, %cst_14 [2] : vector<4x8x8xf32> to vector<4x8xf32>
    %11 = vector.shape_cast %10 : vector<4x8xf32> to vector<4x8x1xf32>
    %12 = arith.maximumf %9, %11 : vector<4x8x1xf32>
    %13 = arith.subf %9, %12 : vector<4x8x1xf32>
    %14 = math.exp %13 : vector<4x8x1xf32>
    %15 = vector.broadcast %12 : vector<4x8x1xf32> to vector<4x8x8xf32>
    %16 = arith.subf %8, %15 : vector<4x8x8xf32>
    %17 = math.exp %16 : vector<4x8x8xf32>
    %c0_15 = arith.constant 0 : index
    %c0_16 = arith.constant 0 : index
    %c0_17 = arith.constant 0 : index
    %18 = vector.load %arg14[%c0_15, %c0_16, %c0_17] : memref<4x8x1xf32, #tpu.memory_space<vmem>>, vector<4x8x1xf32>
    %19 = arith.mulf %14, %18 : vector<4x8x1xf32>
    %cst_18 = arith.constant dense<0.000000e+00> : vector<4x8xf32>
    %20 = vector.multi_reduction <add>, %17, %cst_18 [2] : vector<4x8x8xf32> to vector<4x8xf32>
    %21 = vector.shape_cast %20 : vector<4x8xf32> to vector<4x8x1xf32>
    %22 = arith.addf %19, %21 : vector<4x8x1xf32>
    %c0_19 = arith.constant 0 : index
    %c0_20 = arith.constant 0 : index
    %c0_21 = arith.constant 0 : index
    %23 = vector.load %arg14[%c0_19, %c0_20, %c0_21] : memref<4x8x1xf32, #tpu.memory_space<vmem>>, vector<4x8x1xf32>
    tpu.vector_store %arg14[%c0_19, %c0_20, %c0_21], %22 {strides = array<i32>} : memref<4x8x1xf32, #tpu.memory_space<vmem>>, vector<4x8x1xf32>,
    %c0_22 = arith.constant 0 : index
    %c0_23 = arith.constant 0 : index
    %c0_24 = arith.constant 0 : index
    %24 = vector.load %arg15[%c0_22, %c0_23, %c0_24] : memref<4x8x8xf32, #tpu.memory_space<vmem>>, vector<4x8x8xf32>
    %25 = vector.broadcast %14 : vector<4x8x1xf32> to vector<4x8x8xf32>
    %26 = arith.mulf %25, %24 : vector<4x8x8xf32>
    "tpu.trace_start"() <{level = 10 : i32, message = "hqk,hkd->hqd"}> : () -> ()
    %cst_25 = arith.constant dense<0.000000e+00> : vector<4x8x8xf32>
    %27 = tpu.matmul %17, %7, %cst_25 {dimension_numbers = #tpu.dot_dimension_numbers<[2], [1], [1], [2], [0, 0, 0, 1, 1, 2], [0], [0]>} : vector<4x8x8xf32>, vector<4x8x8xf32>, vector<4x8x8xf32> -> vector<4x8x8xf32>
    "tpu.trace_stop"() : () -> ()
    %28 = arith.addf %26, %27 : vector<4x8x8xf32>
    %c0_26 = arith.constant 0 : index
    %c0_27 = arith.constant 0 : index
    %c0_28 = arith.constant 0 : index
    %29 = vector.load %arg15[%c0_26, %c0_27, %c0_28] : memref<4x8x8xf32, #tpu.memory_space<vmem>>, vector<4x8x8xf32>
    tpu.vector_store %arg15[%c0_26, %c0_27, %c0_28], %28 {strides = array<i32>} : memref<4x8x8xf32, #tpu.memory_space<vmem>>, vector<4x8x8xf32>,
    %c0_29 = arith.constant 0 : index
    %c0_30 = arith.constant 0 : index
    %c0_31 = arith.constant 0 : index
    %30 = vector.load %arg13[%c0_29, %c0_30, %c0_31] : memref<4x8x1xf32, #tpu.memory_space<vmem>>, vector<4x8x1xf32>
    tpu.vector_store %arg13[%c0_29, %c0_30, %c0_31], %12 {strides = array<i32>} : memref<4x8x1xf32, #tpu.memory_space<vmem>>, vector<4x8x1xf32>,
    %c0_i32_32 = arith.constant 0 : i32
    %31 = arith.cmpi eq, %arg2, %c0_i32_32 : i32
    %32 = arith.extui %31 : i1 to i32
    %c0_i32_33 = arith.constant 0 : i32
    %33 = arith.cmpi ne, %32, %c0_i32_33 : i32
    scf.if %33 {
      %c0_34 = arith.constant 0 : index
      %c0_35 = arith.constant 0 : index
      %c0_36 = arith.constant 0 : index
      %34 = vector.load %arg15[%c0_34, %c0_35, %c0_36] : memref<4x8x8xf32, #tpu.memory_space<vmem>>, vector<4x8x8xf32>
      %c0_37 = arith.constant 0 : index
      %c0_38 = arith.constant 0 : index
      %c0_39 = arith.constant 0 : index
      %35 = vector.load %arg14[%c0_37, %c0_38, %c0_39] : memref<4x8x1xf32, #tpu.memory_space<vmem>>, vector<4x8x1xf32>
      %36 = tpu.reciprocal %35 : vector<4x8x1xf32> -> vector<4x8x1xf32>
      %37 = vector.broadcast %36 : vector<4x8x1xf32> to vector<4x8x8xf32>
      %38 = arith.mulf %34, %37 : vector<4x8x8xf32>
      %39 = vector.extract_strided_slice %38 {offsets = [0, 0, 0], sizes = [1, 8, 8], strides = [1, 1, 1]} : vector<4x8x8xf32> to vector<1x8x8xf32>
      %40 = vector.shape_cast %39 : vector<1x8x8xf32> to vector<8x8xf32>
      %41 = vector.extract_strided_slice %38 {offsets = [1, 0, 0], sizes = [1, 8, 8], strides = [1, 1, 1]} : vector<4x8x8xf32> to vector<1x8x8xf32>
      %42 = vector.shape_cast %41 : vector<1x8x8xf32> to vector<8x8xf32>
      %43 = vector.extract_strided_slice %38 {offsets = [2, 0, 0], sizes = [1, 8, 8], strides = [1, 1, 1]} : vector<4x8x8xf32> to vector<1x8x8xf32>
      %44 = vector.shape_cast %43 : vector<1x8x8xf32> to vector<8x8xf32>
      %45 = vector.extract_strided_slice %38 {offsets = [3, 0, 0], sizes = [1, 8, 8], strides = [1, 1, 1]} : vector<4x8x8xf32> to vector<1x8x8xf32>
      %46 = vector.shape_cast %45 : vector<1x8x8xf32> to vector<8x8xf32>
      %47 = tpu.concatenate %40, %42, %44, %46 in 1 : vector<8x8xf32>, vector<8x8xf32>, vector<8x8xf32>, vector<8x8xf32> -> vector<8x32xf32>
      %c0_40 = arith.constant 0 : index
      %c0_41 = arith.constant 0 : index
      %c0_42 = arith.constant 0 : index
      %48 = vector.load %arg3[%c0_40, %c0_41, %c0_42] : memref<1x8x32xf32, #tpu.memory_space<vmem>>, vector<1x8x32xf32>
      %49 = vector.shape_cast %48 : vector<1x8x32xf32> to vector<8x32xf32>
      %c0_43 = arith.constant 0 : index
      %c0_44 = arith.constant 0 : index
      %c0_45 = arith.constant 0 : index
      %50 = vector.load %arg4[%c0_43, %c0_44, %c0_45] : memref<1x8x32xf32, #tpu.memory_space<vmem>>, vector<1x8x32xf32>
      %51 = vector.shape_cast %50 : vector<1x8x32xf32> to vector<8x32xf32>
      %52 = arith.mulf %49, %51 : vector<8x32xf32>
      %53 = arith.addf %47, %52 : vector<8x32xf32>
      %c0_46 = arith.constant 0 : index
      %c0_47 = arith.constant 0 : index
      %54 = vector.load %arg9[%c0_46, %c0_47] : memref<32x32xf32, #tpu.memory_space<vmem>>, vector<32x32xf32>
      %cst_48 = arith.constant dense<0.000000e+00> : vector<8x32xf32>
      %55 = tpu.matmul %53, %54, %cst_48 {dimension_numbers = #tpu.dot_dimension_numbers<[1], [0], [0], [1], [0, 0, 1, 1], [], []>} : vector<8x32xf32>, vector<32x32xf32>, vector<8x32xf32> -> vector<8x32xf32>
      %c0_49 = arith.constant 0 : index
      %c0_50 = arith.constant 0 : index
      %56 = vector.load %arg10[%c0_49, %c0_50] : memref<1x32xf32, #tpu.memory_space<vmem>>, vector<1x32xf32>
      %57 = vector.broadcast %56 : vector<1x32xf32> to vector<8x32xf32>
      %58 = arith.addf %55, %57 : vector<8x32xf32>
      %c0_51 = arith.constant 0 : index
      %c0_52 = arith.constant 0 : index
      %c0_53 = arith.constant 0 : index
      %59 = vector.load %arg11[%c0_51, %c0_52, %c0_53] : memref<1x8x32xf32, #tpu.memory_space<vmem>>, vector<1x8x32xf32>
      %60 = vector.shape_cast %59 : vector<1x8x32xf32> to vector<8x32xf32>
      %61 = vector.shape_cast %58 : vector<8x32xf32> to vector<1x8x32xf32>
      tpu.vector_store %arg11[%c0_51, %c0_52, %c0_53], %61 {strides = array<i32>} : memref<1x8x32xf32, #tpu.memory_space<vmem>>, vector<1x8x32xf32>,
    } else {
    }
    return
  }
  func.func @transform_0(%arg0: i32, %arg1: i32, %arg2: i32) -> (i32, i32, i32) {
    %c0_i32 = arith.constant 0 : i32
    %c0_i32_0 = arith.constant 0 : i32
    return %arg0, %arg1, %c0_i32 : i32, i32, i32
  }
  func.func @transform_1(%arg0: i32, %arg1: i32, %arg2: i32) -> (i32, i32, i32) {
    %c0_i32 = arith.constant 0 : i32
    %c0_i32_0 = arith.constant 0 : i32
    return %arg0, %arg1, %c0_i32 : i32, i32, i32
  }
  func.func @transform_2(%arg0: i32, %arg1: i32, %arg2: i32) -> (i32, i32, i32, i32) {
    %c0_i32 = arith.constant 0 : i32
    %c0_i32_0 = arith.constant 0 : i32
    %c0_i32_1 = arith.constant 0 : i32
    return %arg0, %c0_i32, %arg2, %c0_i32_0 : i32, i32, i32, i32
  }
  func.func @transform_3(%arg0: i32, %arg1: i32, %arg2: i32) -> (i32, i32, i32, i32) {
    %c0_i32 = arith.constant 0 : i32
    %c0_i32_0 = arith.constant 0 : i32
    %c0_i32_1 = arith.constant 0 : i32
    return %arg0, %c0_i32, %arg2, %c0_i32_0 : i32, i32, i32, i32
  }
  func.func @transform_4(%arg0: i32, %arg1: i32, %arg2: i32) -> (i32, i32) {
    %c0_i32 = arith.constant 0 : i32
    %c0_i32_0 = arith.constant 0 : i32
    %c0_i32_1 = arith.constant 0 : i32
    return %c0_i32, %c0_i32_0 : i32, i32
  }
  func.func @transform_5(%arg0: i32, %arg1: i32, %arg2: i32) -> (i32, i32) {
    %c0_i32 = arith.constant 0 : i32
    %c0_i32_0 = arith.constant 0 : i32
    %c0_i32_1 = arith.constant 0 : i32
    return %c0_i32, %c0_i32_0 : i32, i32
  }
  func.func @transform_6(%arg0: i32, %arg1: i32, %arg2: i32) -> (i32, i32) {
    %c0_i32 = arith.constant 0 : i32
    %c0_i32_0 = arith.constant 0 : i32
    %c0_i32_1 = arith.constant 0 : i32
    return %c0_i32, %c0_i32_0 : i32, i32
  }
  func.func @transform_7(%arg0: i32, %arg1: i32, %arg2: i32) -> (i32, i32) {
    %c0_i32 = arith.constant 0 : i32
    %c0_i32_0 = arith.constant 0 : i32
    %c0_i32_1 = arith.constant 0 : i32
    return %c0_i32, %c0_i32_0 : i32, i32
  }
  func.func @transform_8(%arg0: i32, %arg1: i32, %arg2: i32) -> (i32, i32, i32) {
    %c0_i32 = arith.constant 0 : i32
    %c0_i32_0 = arith.constant 0 : i32
    return %arg0, %arg1, %c0_i32 : i32, i32, i32
  }
}

</mosaic_0001>

<bundles_post_ra>
// kernel: tpu_custom_call.1
= control target key start
LH: loop header
LB: loop body
LE: loop exit
PB: predicated region body
PF: predicated region fallthrough
CT: control target
= control target key end

     0   :  { %s3011_s0 = inlined_call_operand.hbm [shape: f32[2,8,32], index: 0, kind: input, shape index: {}]   ;;  %s3012_s1 = inlined_call_operand.hbm [shape: f32[2,8,32], index: 1, kind: input, shape index: {}]   ;;  %s3013_s2 = inlined_call_operand.hbm [shape: f32[2,4,8,8], index: 2, kind: input, shape index: {}]   ;;  %s3014_s3 = inlined_call_operand.hbm [shape: f32[2,4,8,8], index: 3, kind: input, shape index: {}]   ;;  %s3015_s4 = inlined_call_operand.hbm [shape: f32[32,32], index: 4, kind: input, shape index: {}]   ;;  %s3016_s5 = inlined_call_operand.hbm [shape: f32[1,32], index: 5, kind: input, shape index: {}]   ;;  %s3017_s6 = inlined_call_operand.hbm [shape: f32[32,32], index: 6, kind: input, shape index: {}]   ;;  %s3018_s7 = inlined_call_operand.hbm [shape: f32[1,32], index: 7, kind: input, shape index: {}]   ;;  %s3019_s8 = inlined_call_operand.hbm [shape: f32[2,8,32], index: 8, kind: output, shape index: {}]  }
   0x1   :  { %3050 = sst [smem:[#allocation37_spill]] %s3012_s1 }
   0x2   :  { %3051 = sst [smem:[#allocation38_spill]] %s3015_s4 }
   0x3   :  { %3052 = sst [smem:[#allocation39_spill]] %s3016_s5 }
   0x4   :  { %3053 = sst [smem:[#allocation40_spill]] %s3019_s8 }
   0x5   :  { %13 = vsyncpa [#allocation7], 0 }
   0x6   :  { %15 = vsyncpa [#allocation7 + $0x1], 0 }
   0x7   :  { %16 = vsyncpa [#allocation10], 0 }
   0x8   :  { %18 = vsyncpa [#allocation10 + $0x1], 0 }
   0x9   :  { %19 = vsyncpa [#allocation13], 0 }
   0xa   :  { %21 = vsyncpa [#allocation13 + $0x1], 0 }
   0xb   :  { %22 = vsyncpa [#allocation16], 0 }
   0xc   :  { %23 = vsyncpa [#allocation19], 0 }
   0xd   :  { %24 = vsyncpa [#allocation8], 0 }
   0xe   :  { %26 = vsyncpa [#allocation8 + $0x1], 0  ;;  %s2448_s27 = smov 0   ;;  %s2450_s28 = smov 0  }
   0xf   :  { %s2452_s29 = smov 0   ;;  %s2454_s30 = smov 0  }
  0x10   :  { %s2456_s9 = smov 0   ;;  %s2458_s10 = smov 0  }
  0x11 LB: > { %3054 = sst [smem:[#allocation28_spill]] %s2359_s27  ;;  %s2479_s11 = sadd.s32 4294967295, %s2379_s10   ;;  %s2379_s10 = sphi %s2458_s10, %s32_s10   ;;  %s2375_s9 = sphi %s2456_s9, %s3112_s9   ;;  %s2371_s30 = sphi %s2454_s30, %s3111_s30   ;;  %s2367_s29 = sphi %s2452_s29, %s3107_s29   ;;  %s2363_s28 = sphi %s2450_s28, %s3110_s28   ;;  %s2359_s27 = sphi %s2448_s27, %s3109_s27  }
  0x12   : > { %3055 = sst [smem:[#allocation29_spill]] %s2367_s29  ;;  %s1739_s12 = sadd.s32 4294967294, %s2379_s10  }
  0x13   : > { %3056 = sst [smem:[#allocation30_spill]] %s2371_s30  ;;  %p73_p0 = scmp.ne.s32.totalorder %s2363_s28, %s2359_s27 }
  0x14   : > { %3057 = sst [smem:[#allocation31_spill]] %s2479_s11  ;;  %p3020_p1 = scmp.eq.s32.totalorder %s2479_s11, 0 }
  0x15   : > { %p273_p3 = scmp.eq.s32.totalorder %s1739_s12, 1  ;;  %p1740_p5 = scmp.ge.s32.totalorder %s2379_s10, 1 }
  0x16   : > { %p2488_p4 = por %p3020_p1, %p73_p0  ;;  %p280_p7 = scmp.lt.s32.totalorder %s2379_s10, 3 }
  0x17   : > { %p2493_p6 = por %p273_p3, %p73_p0  ;;  %s2381_s16 = smov [#allocation14]  }
  0x18   : > { %s3058_s13 = scalar_select %p2488_p4, 1, 0 }
  0x19   : > { %s3060_s14 = scalar_select %p2493_p6, 1, 0 }
  0x1a   : > { %3059 = sst [smem:[#allocation32_spill]] %s3058_s13  ;;  %p2498_p8 = pnand %p1740_p5, %p280_p7 }
  0x1b   : > { %3061 = sst [smem:[#allocation33_spill]] %s3060_s14  ;;  %s292_s17 = sshll.u32 %s2381_s16, 4  ;;  %s2502_s17 = int_to_ptr.vmem [resolvable:$true] %s292_s17 }
  0x1c   : > { %s3062_s15 = scalar_select %p2498_p8, 1, 0 }
  0x1d   : > { %p1914_p9 = pneg %p2498_p8  ;;  %s2382_s19 = smov [#allocation15]  }
  0x1e   : > { %s306_s20 = sshll.u32 %s2382_s19, 4  ;;  %s3064_s4 = sld [smem:[#allocation38_spill]]  ;;  %s2513_s20 = int_to_ptr.vmem [resolvable:$true] %s306_s20 }
  0x1f   : > { %p2509_p11 = pnand %p1914_p9, %p3020_p1 }
  0x21   : > { %s3063_s18 = scalar_select %p2509_p11, 1, 0 }
  0x22   : > { %p2523_p13 = pneg %p2509_p11 }
  0x24   : > { %s2045_s23 = scalar_lea.hbm %s3064_s4, 512 }
  0x25   : > { %p2046_p12 = scmp.ne.s32.totalorder %s3064_s4, %s2045_s23  ;;  %p2052_p5 = scmp.lt.u32.totalorder %s2045_s23, %s3064_s4 }
  0x26   : > { %s3065_s26 = scalar_select %p2523_p13, 1, 0 }
  0x27   : > { %p2048_p0 = pnand %p2523_p13, %p2046_p12 }
  0x29   : > { %p2049_p3 = pneg %p2048_p0 }
  0x2b   : > { %p2054_p7 = pnand %p2052_p5, %p2049_p3 }
  0x2d   : > { %2057 = shalt.err (!%p2054_p7)
}
  0x2e   : > { %s2058_s19 = scalar_lea.vmem %s2502_s17, 512  ;;  %p2066_p2 = scmp.lt.s32.totalorder %s2502_s17, %s2502_s17 }
  0x2f   : > { %p2059_p9 = scmp.ne.s32.totalorder %s2502_s17, %s2058_s19  ;;  %p2067_p6 = scmp.lt.s32.totalorder %s2058_s19, %s2058_s19 }
  0x31   : > { %p2061_p10 = pnand %p2059_p9, %p2523_p13  ;;  %p2068_p12 = por %p2067_p6, %p2066_p2 }
  0x33   : > { %p2062_p1 = pneg %p2061_p10 }
  0x35   : > { %p2069_p0 = pnand %p2068_p12, %p2062_p1 }
  0x37   : > { %2072 = shalt.err (!%p2069_p0)
}
  0x38   : > { %s3024_s21 = smov 128   ;;  %s3026_s22 = smov 8  }
  0x39   : > { %1917 = dma.hbm_to_vmem [thread:$0]  (!%p2509_p11), %s3064_s4, 512, %s2502_s17, [#allocation13], %s3024_s21, %s3024_s21, %s3026_s22  }
  0x3a   : > { %s3066_s5 = sld [smem:[#allocation39_spill]] }
  0x40   : > { %s2073_s16 = scalar_lea.hbm %s3066_s5, 16 }
  0x41   : > { %p2074_p1 = scmp.ne.s32.totalorder %s3066_s5, %s2073_s16  ;;  %p2080_p10 = scmp.lt.u32.totalorder %s2073_s16, %s3066_s5 }
  0x43   : > { %p2076_p2 = pnand %p2074_p1, %p2523_p13 }
  0x45   : > { %p2077_p6 = pneg %p2076_p2 }
  0x47   : > { %p2082_p3 = pnand %p2080_p10, %p2077_p6 }
  0x49   : > { %2085 = shalt.err (!%p2082_p3)
}
  0x4a   : > { %s2086_s17 = scalar_lea.vmem %s2513_s20, 16  ;;  %s2093_s14 = scalar_lea.vmem %s2513_s20, 32 }
  0x4b   : > { %p2087_p5 = scmp.ne.s32.totalorder %s2513_s20, %s2086_s17  ;;  %p2094_p12 = scmp.lt.s32.totalorder %s2513_s20, %s2513_s20 }
  0x4c   : > { %p2095_p0 = scmp.lt.s32.totalorder %s2093_s14, %s2086_s17 }
  0x4d   : > { %p2089_p7 = pnand %p2087_p5, %p2523_p13 }
  0x4e   : > { %p2096_p1 = por %p2095_p0, %p2094_p12 }
  0x4f   : > { %p2090_p9 = pneg %p2089_p7 }
  0x51   : > { %p2097_p2 = pnand %p2096_p1, %p2090_p9 }
  0x53   : > { %2100 = shalt.err (!%p2097_p2)
}
  0x54   : > { %1920 = dma.hbm_to_vmem [thread:$0]  (!%p2509_p11), %s3066_s5, 16, %s2513_s20, [#allocation16]  }
  0x55   : > { %s51_s23 = sadd.s32 1, %s2375_s9  ;;  %s60_s24 = sadd.s32 1, %s2367_s29 }
  0x56   : > { %p53_p6 = scmp.ge.s32.totalorder %s51_s23, 2  ;;  %p67_p10 = scmp.ne.s32.totalorder %s2367_s29, %s2363_s28 }
  0x57   : > { %p68_p3 = scmp.eq.s32.totalorder %s2379_s10, 0  ;;  %p1948_p5 = scmp.lt.s32.totalorder %s2379_s10, 2 }
  0x58   : > { %s3114_s23 = smov (%p53_p6, %s51_s23), 0  ;;  %p3068_p9 = scmp.eq.s32.totalorder %s2479_s11, 1 }
  0x59   : > { %3067 = sst [smem:[#allocation34_spill]] %s3114_s23  ;;  %p69_p7 = por %p68_p3, %p67_p10 }
  0x5a   : > { %p2581_p12 = por %p3068_p9, %p67_p10  ;;  %s55_s20 = ssub.s32 %s2375_s9, %s3114_s23 }
  0x5b   : > { %s2588_s12 = sand.u32 1, %s2367_s29   ;;  %p58_p0 = scmp.eq.s32.totalorder %s55_s20, 0 }
  0x5c   : > { %s3069_s25 = scalar_select %p2581_p12, 1, 0 }
  0x5d   : > { %s3029_s16 = sshll.u32 %s2588_s12, 3  ;;  %s3030_s19 = sshll.u32 %s2375_s9, 7 }
  0x5e   : > { %3070 = sst [smem:[#allocation35_spill]] %s3069_s25  ;;  %p2592_p1 = pnand %p1948_p5, %p69_p7 }
  0x5f   : > { %s2597_s14 = scalar_select %p58_p0, %s2367_s29, %s60_s24  }
  0x60   : > { %s3071_s17 = scalar_select %p2592_p1, 1, 0 }
  0x61   : > { %3072 = sst [smem:[#allocation36_spill]] %s2597_s14  ;;  %s3033_s8 = sand.u32 1, %s2379_s10  }
  0x62   : > { %s3073_s1 = sld [smem:[#allocation37_spill]]  ;;  %s364_s20 = scalar_lea.vmem [#allocation9], %s3029_s16 }
  0x63   : > { %s372_s4 = sshll.u32 %s364_s20, 4  ;;  %s2614_s24 = scalar_lea.sflag [#allocation10], %s3033_s8  ;;  %s2609_s4 = int_to_ptr.vmem [resolvable:$true] %s372_s4 }
  0x64   : > { %p2620_p6 = pneg %p2592_p1 }
  0x66   : > { %s3074_s21 = scalar_select %p2620_p6, 1, 0 }
  0x68   : > { %s2605_s22 = scalar_lea.hbm %s3073_s1, %s3030_s19  ;;  %s2106_s20 = scalar_lea.hbm %s3073_s1, 256 }
  0x69   : > { %s2101_s23 = scalar_lea.hbm %s2605_s22, 128  ;;  %p2107_p5 = scmp.lt.u32.totalorder %s2605_s22, %s3073_s1 }
  0x6a   : > { %p2102_p2 = scmp.ne.s32.totalorder %s2605_s22, %s2101_s23  ;;  %p2108_p7 = scmp.lt.u32.totalorder %s2106_s20, %s2101_s23 }
  0x6b   : > { %p2110_p0 = scmp.lt.u32.totalorder %s2101_s23, %s2605_s22 }
  0x6c   : > { %p2104_p10 = pnand %p2620_p6, %p2102_p2  ;;  %p2109_p9 = por %p2108_p7, %p2107_p5 }
  0x6e   : > { %p2105_p3 = pneg %p2104_p10  ;;  %p2111_p12 = por %p2110_p0, %p2109_p9 }
  0x70   : > { %p2112_p4 = pnand %p2111_p12, %p2105_p3 }
  0x72   : > { %2115 = shalt.err (!%p2112_p4)
}
  0x73   : > { %s2116_s8 = scalar_lea.vmem %s2609_s4, 128  ;;  %s2385_s16 = smov [#allocation9]  }
  0x74   : > { %p2117_p2 = scmp.ne.s32.totalorder %s2609_s4, %s2116_s8  ;;  %s2121_s27 = sshll.u32 %s2385_s16, 4  ;;  %s2122_s27 = int_to_ptr.vmem [resolvable:$false] %s2121_s27 }
  0x75   : > { %s2123_s5 = scalar_lea.vmem %s2122_s27, 256  ;;  %p2124_p11 = scmp.lt.s32.totalorder %s2609_s4, %s2122_s27 }
  0x76   : > { %p2119_p10 = pnand %p2117_p2, %p2620_p6  ;;  %p2125_p13 = scmp.lt.s32.totalorder %s2123_s5, %s2116_s8 }
  0x78   : > { %p2120_p8 = pneg %p2119_p10  ;;  %p2126_p5 = por %p2125_p13, %p2124_p11 }
  0x7a   : > { %p2127_p7 = pnand %p2126_p5, %p2120_p8 }
  0x7c   : > { %2130 = shalt.err (!%p2127_p7)
}
  0x7d   : > { %1933 = dma.hbm_to_vmem [thread:$0]  (!%p2592_p1), %s2605_s22, 128, %s2609_s4, %s2614_s24  }
  0x7e   : > { %s3075_s19 = sshll.u32 %s2588_s12, 5  ;;  %s2386_s1 = smov [#allocation17]  }
  0x7f   : > { %s383_s20 = scalar_lea.vmem [#allocation11], %s3075_s19  ;;  %s3076_s8 = smov %s3075_s19 }
  0x80   : > { %s391_s16 = sshll.u32 %s383_s20, 4  ;;  %s405_s27 = scalar_lea.vmem [#allocation12], %s3076_s8  ;;  %s2647_s16 = int_to_ptr.vmem [resolvable:$true] %s391_s16 }
  0x81   : > { %s413_s5 = sshll.u32 %s405_s27, 4  ;;  %s316_s14 = sshll.u32 %s2386_s1, 4  ;;  %s2651_s5 = int_to_ptr.vmem [resolvable:$true] %s413_s5  ;;  %s317_s14 = int_to_ptr.vmem [resolvable:$true] %s316_s14 }
  0x82   : > { %s2131_s30 = scalar_lea.hbm %s3017_s6, 512  ;;  %p3077_p8 = scmp.ne.s32.totalorder %s3065_s26, 0 }
  0x83   : > { %p2132_p4 = scmp.ne.s32.totalorder %s3017_s6, %s2131_s30  ;;  %p2138_p12 = scmp.lt.u32.totalorder %s2131_s30, %s3017_s6 }
  0x85   : > { %p2134_p11 = pnand %p2132_p4, %p3077_p8 }
  0x87   : > { %p2135_p13 = pneg %p2134_p11 }
  0x89   : > { %p2140_p3 = pnand %p2138_p12, %p2135_p13 }
  0x8b   : > { %2143 = shalt.err (!%p2140_p3)
}
  0x8c   : > { %s2144_s20 = scalar_lea.vmem %s317_s14, 512  ;;  %p2152_p10 = scmp.lt.s32.totalorder %s317_s14, %s317_s14 }
  0x8d   : > { %p2145_p9 = scmp.ne.s32.totalorder %s317_s14, %s2144_s20  ;;  %p2153_p5 = scmp.lt.s32.totalorder %s2144_s20, %s2144_s20 }
  0x8f   : > { %p2147_p0 = pnand %p2145_p9, %p3077_p8  ;;  %p2154_p7 = por %p2153_p5, %p2152_p10 }
  0x91   : > { %p2148_p2 = pneg %p2147_p0 }
  0x93   : > { %p2155_p1 = pnand %p2154_p7, %p2148_p2 }
  0x95   : > { %2158 = shalt.err (!%p2155_p1)
}
  0x96   : > { %p3078_p4 = scmp.ne.s32.totalorder %s3063_s18, 0  ;;  %s3079_s1 = smov 8  }
  0x97   : > { %s3080_s29 = smov 128   ;;  %s2387_s25 = smov [#allocation18]  }
  0x98   : > { %1923 = dma.hbm_to_vmem [thread:$0]  (!%p3078_p4), %s3017_s6, 512, %s317_s14, [#allocation16], %s3080_s29, %s3080_s29, %s3079_s1  }
  0x99   : > { %s330_s8 = sshll.u32 %s2387_s25, 4  ;;  %s2159_s22 = scalar_lea.hbm %s3018_s7, 16  ;;  %s331_s8 = int_to_ptr.vmem [resolvable:$true] %s330_s8 }
  0x9a   : > { %p2160_p1 = scmp.ne.s32.totalorder %s3018_s7, %s2159_s22  ;;  %p2166_p12 = scmp.lt.u32.totalorder %s2159_s22, %s3018_s7 }
  0x9c   : > { %p2162_p11 = pnand %p2160_p1, %p3077_p8 }
  0x9e   : > { %p2163_p13 = pneg %p2162_p11 }
  0xa0   : > { %p2168_p3 = pnand %p2166_p12, %p2163_p13 }
  0xa2   : > { %2171 = shalt.err (!%p2168_p3)
}
  0xa3   : > { %s2172_s14 = scalar_lea.vmem %s331_s8, 16  ;;  %s2179_s11 = scalar_lea.vmem %s331_s8, 32 }
  0xa4   : > { %p2173_p9 = scmp.ne.s32.totalorder %s331_s8, %s2172_s14  ;;  %p2180_p10 = scmp.lt.s32.totalorder %s331_s8, %s331_s8 }
  0xa5   : > { %p2181_p5 = scmp.lt.s32.totalorder %s2179_s11, %s2172_s14 }
  0xa6   : > { %p2175_p0 = pnand %p2173_p9, %p3077_p8 }
  0xa7   : > { %p2182_p7 = por %p2181_p5, %p2180_p10 }
  0xa8   : > { %p2176_p2 = pneg %p2175_p0 }
  0xaa   : > { %p2183_p6 = pnand %p2182_p7, %p2176_p2 }
  0xac   : > { %2186 = shalt.err (!%p2183_p6)
}
  0xad   : > { %1926 = dma.hbm_to_vmem [thread:$0]  (!%p3078_p4), %s3018_s7, 16, %s331_s8, [#allocation19]  }
  0xae   : > { %s3081_s13 = sshll.u32 %s2375_s9, 7  ;;  %s3082_s4 = sshll.u32 %s2588_s12, 3 }
  0xaf   : > { %s2697_s27 = scalar_lea.hbm %s3011_s0, %s3081_s13  ;;  %s345_s18 = scalar_lea.vmem [#allocation6], %s3082_s4 }
  0xb0   : > { %s353_s22 = sshll.u32 %s345_s18, 4  ;;  %s3083_s19 = sshll.u32 %s2375_s9, 9  ;;  %s2701_s22 = int_to_ptr.vmem [resolvable:$true] %s353_s22 }
  0xb1   : > { %s2708_s8 = scalar_lea.hbm %s3013_s2, %s3083_s19  ;;  %s342_s11 = scalar_lea.sflag [#allocation7], %s2588_s12 }
  0xb2   : > { %s2187_s30 = scalar_lea.hbm %s2697_s27, 128  ;;  %p3084_p8 = scmp.ne.s32.totalorder %s3074_s21, 0 }
  0xb3   : > { %p2188_p6 = scmp.ne.s32.totalorder %s2697_s27, %s2187_s30  ;;  %s2192_s26 = scalar_lea.hbm %s3011_s0, 256 }
  0xb4   : > { %p2193_p11 = scmp.lt.u32.totalorder %s2697_s27, %s3011_s0  ;;  %p2194_p13 = scmp.lt.u32.totalorder %s2192_s26, %s2187_s30 }
  0xb5   : > { %p2190_p4 = pnand %p2188_p6, %p3084_p8  ;;  %p2196_p3 = scmp.lt.u32.totalorder %s2187_s30, %s2697_s27 }
  0xb6   : > { %p2195_p12 = por %p2194_p13, %p2193_p11 }
  0xb7   : > { %p2191_p1 = pneg %p2190_p4 }
  0xb8   : > { %p2197_p9 = por %p2196_p3, %p2195_p12 }
  0xba   : > { %p2198_p0 = pnand %p2197_p9, %p2191_p1 }
  0xbc   : > { %2201 = shalt.err (!%p2198_p0)
}
  0xbd   : > { %s2202_s12 = scalar_lea.vmem %s2701_s22, 128  ;;  %s2388_s18 = smov [#allocation6]  }
  0xbe   : > { %p2203_p2 = scmp.ne.s32.totalorder %s2701_s22, %s2202_s12  ;;  %s2207_s19 = sshll.u32 %s2388_s18, 4  ;;  %s2208_s19 = int_to_ptr.vmem [resolvable:$false] %s2207_s19 }
  0xbf   : > { %s2209_s20 = scalar_lea.vmem %s2208_s19, 256  ;;  %p2210_p7 = scmp.lt.s32.totalorder %s2701_s22, %s2208_s19 }
  0xc0   : > { %p2205_p10 = pnand %p2203_p2, %p3084_p8  ;;  %p2211_p6 = scmp.lt.s32.totalorder %s2209_s20, %s2202_s12 }
  0xc2   : > { %p2206_p5 = pneg %p2205_p10  ;;  %p2212_p4 = por %p2211_p6, %p2210_p7 }
  0xc4   : > { %p2213_p11 = pnand %p2212_p4, %p2206_p5 }
  0xc6   : > { %2216 = shalt.err (!%p2213_p11)
}
  0xc7   : > { %p3085_p1 = scmp.ne.s32.totalorder %s3071_s17, 0  ;;  %s2217_s14 = scalar_lea.hbm %s2708_s8, 512 }
  0xc8   : > { %p2218_p13 = scmp.ne.s32.totalorder %s2708_s8, %s2217_s14  ;;  %s2222_s13 = scalar_lea.hbm %s3013_s2, 1024 }
  0xc9   : > { %1930 = dma.hbm_to_vmem [thread:$0]  (!%p3085_p1), %s2697_s27, 128, %s2701_s22, %s342_s11  }
  0xca   : > { %p2220_p12 = pnand %p2218_p13, %p3084_p8  ;;  %p2223_p9 = scmp.lt.u32.totalorder %s2708_s8, %s3013_s2 }
  0xcb   : > { %p2224_p0 = scmp.lt.u32.totalorder %s2222_s13, %s2217_s14  ;;  %p2226_p10 = scmp.lt.u32.totalorder %s2217_s14, %s2708_s8 }
  0xcc   : > { %p2221_p3 = pneg %p2220_p12 }
  0xcd   : > { %p2225_p2 = por %p2224_p0, %p2223_p9 }
  0xcf   : > { %p2227_p5 = por %p2226_p10, %p2225_p2 }
  0xd1   : > { %p2228_p7 = pnand %p2227_p5, %p2221_p3 }
  0xd3   : > { %2231 = shalt.err (!%p2228_p7)
}
  0xd4   : > { %s2232_s27 = scalar_lea.vmem %s2647_s16, 512  ;;  %s2389_s22 = smov [#allocation11]  }
  0xd5   : > { %p2233_p6 = scmp.ne.s32.totalorder %s2647_s16, %s2232_s27  ;;  %s2237_s11 = sshll.u32 %s2389_s22, 4  ;;  %s2238_s11 = int_to_ptr.vmem [resolvable:$false] %s2237_s11 }
  0xd6   : > { %s2239_s4 = scalar_lea.vmem %s2238_s11, 1024  ;;  %p2240_p13 = scmp.lt.s32.totalorder %s2647_s16, %s2238_s11 }
  0xd7   : > { %p2235_p4 = pnand %p2233_p6, %p3084_p8  ;;  %p2241_p12 = scmp.lt.s32.totalorder %s2239_s4, %s2232_s27 }
  0xd9   : > { %p2236_p11 = pneg %p2235_p4  ;;  %p2242_p9 = por %p2241_p12, %p2240_p13 }
  0xdb   : > { %p2243_p0 = pnand %p2242_p9, %p2236_p11 }
  0xdd   : > { %2246 = shalt.err (!%p2243_p0)
}
  0xde   : > { %1936 = dma.hbm_to_vmem [thread:$0]  (!%p3085_p1), %s2708_s8, 512, %s2647_s16, %s2614_s24, %s3080_s29, %s3080_s29, %s3079_s1  }
  0xdf   : > { %s3086_s12 = sshll.u32 %s2375_s9, 9  ;;  %s3087_s14 = sand.u32 1, %s2379_s10  }
  0xe0   : > { %s2762_s20 = scalar_lea.hbm %s3014_s3, %s3086_s12  ;;  %s2766_s30 = scalar_lea.sflag [#allocation13], %s3087_s14 }
  0xe1   : > { %s2247_s25 = scalar_lea.hbm %s2762_s20, 512  ;;  %s2252_s16 = scalar_lea.hbm %s3014_s3, 1024 }
  0xe2   : > { %p2248_p3 = scmp.ne.s32.totalorder %s2762_s20, %s2247_s25  ;;  %p2253_p5 = scmp.lt.u32.totalorder %s2762_s20, %s3014_s3 }
  0xe3   : > { %p2254_p7 = scmp.lt.u32.totalorder %s2252_s16, %s2247_s25  ;;  %p2256_p4 = scmp.lt.u32.totalorder %s2247_s25, %s2762_s20 }
  0xe4   : > { %p2250_p2 = pnand %p2248_p3, %p3084_p8 }
  0xe5   : > { %p2255_p6 = por %p2254_p7, %p2253_p5 }
  0xe6   : > { %p2251_p10 = pneg %p2250_p2 }
  0xe7   : > { %p2257_p11 = por %p2256_p4, %p2255_p6 }
  0xe9   : > { %p2258_p13 = pnand %p2257_p11, %p2251_p10 }
  0xeb   : > { %2261 = shalt.err (!%p2258_p13)
}
  0xec   : > { %s2262_s23 = scalar_lea.vmem %s2651_s5, 512  ;;  %s2390_s27 = smov [#allocation12]  }
  0xed   : > { %p2263_p12 = scmp.ne.s32.totalorder %s2651_s5, %s2262_s23  ;;  %s2267_s22 = sshll.u32 %s2390_s27, 4  ;;  %s2268_s22 = int_to_ptr.vmem [resolvable:$false] %s2267_s22 }
  0xee   : > { %s2269_s11 = scalar_lea.vmem %s2268_s22, 1024  ;;  %p2270_p3 = scmp.lt.s32.totalorder %s2651_s5, %s2268_s22 }
  0xef   : > { %p2265_p9 = pnand %p2263_p12, %p3084_p8  ;;  %p2271_p2 = scmp.lt.s32.totalorder %s2269_s11, %s2262_s23 }
  0xf1   : > { %p2266_p0 = pneg %p2265_p9  ;;  %p2272_p5 = por %p2271_p2, %p2270_p3 }
  0xf3   : > { %p2273_p7 = pnand %p2272_p5, %p2266_p0 }
  0xf5   : > { %2276 = shalt.err (!%p2273_p7)
}
  0xf6   : > { %1939 = dma.hbm_to_vmem [thread:$0]  (!%p3085_p1), %s2762_s20, 512, %s2651_s5, %s2766_s30, %s3080_s29, %s3080_s29, %s3079_s1  }
  0xf7   : > { %p3088_p8 = scmp.ne.s32.totalorder %s3062_s15, 0 }
  0xf8   : > { %s3089_s21 = sld [smem:[#allocation32_spill]] (!%p3088_p8)  ;;  %s2796_s4 = sand.u32 (!%p3088_p8), 1, %s2363_s28  }
  0xf9   : > { %425 = sbr.rel (%p3088_p8) target bundleno = 1773 (0x6ed), region = 52  ;;  %s2799_s12 = sshll.u32 (!%p3088_p8), %s2796_s4, 3 }
  0xfa   : > { %s428_s17 = scalar_lea.sflag (!%p3088_p8), [#allocation7], %s2796_s4  ;;  %s431_s18 = scalar_lea.vmem (!%p3088_p8), [#allocation6], %s2799_s12 }
  0xfe   : > { %p3090_p10 = scmp.ne.s32.totalorder (!%p3088_p8), %s3089_s21, 0 }
 0x100   : > { %2330 = dma.done.wait (%p3090_p10), %s428_s17, 128  }
 0x101   : > { %2332 = vsyncadd (%p3090_p10), %s428_s17, 4294967168  ;;  %s3091_s5 = sld [smem:[#allocation31_spill]]  ;;  %s440_s29 = scalar_lea.vmem [#allocation9], %s2799_s12 }
 0x107   : > { %s436_s15 = sand.u32 1, %s3091_s5  }
 0x108   : > { %s437_s1 = scalar_lea.sflag [#allocation10], %s436_s15 }
 0x109   : > { %2334 = dma.done.wait (%p3090_p10), %s437_s1, 640  }
 0x10a   : > { %2336 = vsyncadd (%p3090_p10), %s437_s1, 4294966656  ;;  %s1759_s19 = sshll.u32 %s2796_s4, 5  ;;  %s455_s14 = scalar_lea.sflag [#allocation13], %s436_s15 }
 0x10b   : > { %s2814_s20 = scalar_lea.vmem [#allocation11], %s1759_s19  ;;  %s2816_s30 = scalar_lea.vmem [#allocation12], %s1759_s19 }
 0x10c   : > { %2338 = dma.done.wait (%p3090_p10), %s455_s14, 512  }
 0x10d   : > { %2340 = vsyncadd (%p3090_p10), %s455_s14, 4294966784  ;;  %p3092_p1 = scmp.eq.s32.totalorder %s3091_s5, 0 }
 0x10f   : > { %2342 = dma.done.wait (%p3092_p1), [#allocation13], 512   ;;  %p3093_p6 = pmov %p3092_p1 }
 0x110   : > { %p3094_p4 = pmov %p3092_p1 }
 0x111   : > { %2344 = vsyncadd (%p3093_p6), [#allocation13], 4294966784 }
 0x112   : > { %2346 = dma.done.wait (%p3094_p4), [#allocation16], 528   ;;  %p3095_p11 = pmov %p3092_p1 }
 0x113   : > { %p3096_p13 = pmov %p3092_p1 }
 0x114   : > { %2348 = vsyncadd (%p3095_p11), [#allocation16], 4294966768 }
 0x115   : > { %2350 = dma.done.wait (%p3096_p13), [#allocation19], 16   ;;  %p3097_p12 = pmov %p3092_p1 }
 0x116   : > { %v2391_v0 = vmov 0.0|0.0   ;;  %vm2392_vm0 = vmmov 0   ;;  %v2393_v1 = vmov 0.0   ;;  %v527_v2 = vld [vmem:[#allocation14] sm:$0xff]  ;;  %v528_v3 = vld [vmem:[#allocation14 + $0x8] sm:$0xff]  ;;  %v529_v4 = vld [vmem:[#allocation14 + $0x10] sm:$0xff] }
 0x117   : > { %2352 = vsyncadd (%p3097_p12), [#allocation19], 4294967280  ;;  %1876 = vmatprep.subr.bf16.mxu0 %v2391_v0  ;;  %1822 = vmatprep.mubr.msk.f32.mxu0 %vm2392_vm0, %v2393_v1  ;;  %v1877_v5 = vpack.c.bf16 %v528_v3, %v527_v2  ;;  %v530_v6 = vld [vmem:[#allocation14 + $0x18] sm:$0xff]  ;;  %v2843_v8 = vld [vmem:[%s431_s18] sm:$0xff]  ;;  %vm538_vm1 = vcmask 261120   ;;  %vm612_vm2 = vcmask 64512  }
 0x118   : > { %1825 = vmatprep.subr.mxu1 %v2393_v1  ;;  %1827 = vmatprep.mubr.msk.f32.mxu1 %vm2392_vm0, %v2393_v1  ;;  %v1880_v7 = vpack.c.bf16 %v530_v6, %v529_v4  ;;  %639 = vst.msk [vmem:[#allocation5] sm:$0xff] %vm612_vm2, %v2393_v1  ;;  %640 = vst.msk [vmem:[#allocation5 + $0x8] sm:$0xff] %vm612_vm2, %v2393_v1  ;;  %v647_v9 = vld [vmem:[%s2814_s20] sm:$0xff]  ;;  %s2394_s25 = smov 104   ;;  %s2395_s13 = smov 120   ;;  %v648_v14 = vld [vmem:[%s2814_s20 + $0x8] sm:$0xff] }
 0x119   : > { %1878 = vmatpush3.bf16.msra.mxu0 %v1877_v5  ;;  %641 = vst.msk [vmem:[#allocation5 + $0x10] sm:$0xff] %vm612_vm2, %v2393_v1  ;;  %642 = vst.msk [vmem:[#allocation5 + $0x18] sm:$0xff] %vm612_vm2, %v2393_v1  ;;  %1826 = vmatpush3.xpose.msk.msra.mxu1 %vm612_vm2, %v647_v9  ;;  %v1766_v10 = vld [vmem:[#allocation15] ss:$0 sm:$0xff]  ;;  %s2396_s24 = smov 112   ;;  %v649_v19 = vld [vmem:[%s2814_s20 + $0x10] sm:$0xff] }
 0x11a   : > { %1879 = vmatprep.subr.bf16.mxu0 %v2391_v0  ;;  %1830 = vmatprep.subr.mxu1 %v2393_v1  ;;  %v650_v21 = vld [vmem:[%s2814_s20 + $0x18] sm:$0xff]  ;;  %vm630_vm3 = vcmask 7168   ;;  %v2397_v24 = vmov -inf   ;;  %v2398_v28 = vmov 0   ;;  %v651_v42 = vld [vmem:[%s2816_s30] sm:$0xff]  ;;  %v652_v56 = vld [vmem:[%s2816_s30 + $0x8] sm:$0xff] }
 0x11b   : > { %631 = vst.msk [vmem:[#allocation3] sm:$0xff] %vm630_vm3, %v2397_v24  ;;  %632 = vst.msk [vmem:[#allocation3 + $0x8] sm:$0xff] %vm630_vm3, %v2397_v24  ;;  %2019 = vset.pattern.permute.xlu0 %v2398_v28  ;;  %2020 = vset.pattern.permute.xlu1 %v2398_v28  ;;  %v653_v59 = vld [vmem:[%s2816_s30 + $0x10] sm:$0xff]  ;;  %v654_v9 = vld [vmem:[%s2816_s30 + $0x18] sm:$0xff]  ;;  %s2399_s16 = smov 8   ;;  %s2400_s8 = smov 16  }
 0x11c   : > { %633 = vst.msk [vmem:[#allocation3 + $0x10] sm:$0xff] %vm630_vm3, %v2397_v24  ;;  %634 = vst.msk [vmem:[#allocation3 + $0x18] sm:$0xff] %vm630_vm3, %v2397_v24  ;;  %s2401_s26 = smov 24   ;;  %s3098_s23 = sld [smem:[#allocation30_spill]]  ;;  %vm1437_vm4 = vcmask 130048   ;;  %vm1439_vm5 = vcmask 195584  }
 0x11d   : > { %1881 = vmatpush3.bf16.msra.mxu0 %v1880_v7  ;;  %635 = vst.msk [vmem:[#allocation4] sm:$0xff] %vm630_vm3, %v2393_v1  ;;  %636 = vst.msk [vmem:[#allocation4 + $0x8] sm:$0xff] %vm630_vm3, %v2393_v1  ;;  %s3099_s27 = sld [smem:[#allocation35_spill]]  ;;  %s521_s11 = scalar_lea.vmem [#allocation20], %s2799_s12 }
 0x11e   : > { %1845 = vmatprep.subr.mxu0 %v2393_v1  ;;  %637 = vst.msk [vmem:[#allocation4 + $0x10] sm:$0xff] %vm630_vm3, %v2393_v1  ;;  %638 = vst.msk [vmem:[#allocation4 + $0x18] sm:$0xff] %vm630_vm3, %v2393_v1  ;;  %s1546_s21 = sshll.u32 %s521_s11, 4  ;;  %s3100_s5 = sld [smem:[#allocation40_spill]]  ;;  %s2963_s21 = int_to_ptr.vmem [resolvable:$true] %s1546_s21 }
 0x11f   : > { %s1532_s1 = scalar_lea.sflag [#allocation8], %s2796_s4  ;;  %s2402_s12 = smov [#allocation20]  }
 0x120   : > { %1823 = vmatmul.mubr.msk.f32.vlgmr.msra.gmra.mrb[0].mxu0 %vm538_vm1, %v2843_v8  ;;  %s2281_s19 = sshll.u32 %s2402_s12, 4  ;;  %s2282_s19 = int_to_ptr.vmem [resolvable:$false] %s2281_s19 }
 0x121   : > { %1847 = vmatprep.mubr.msk.f32.mxu0 %vm2392_vm0, %v2393_v1  ;;  %1846 = vmatpush3.msra.mxu0 %v651_v42  ;;  %s2283_s20 = scalar_lea.vmem %s2282_s19, 256  ;;  %p2284_p5 = scmp.lt.s32.totalorder %s2963_s21, %s2282_s19 }
 0x122   : > { %v2902_v38 = vld [vmem:[#allocation3] sm:$0xff]  ;;  %1855 = vmatprep.subr.mxu0 %v2393_v1  ;;  %v961_v43 = vld [vmem:[#allocation3 + $0x8] sm:$0xff]  ;;  %s1783_s22 = sshll.u32 %s3098_s23, 7 }
 0x123   : > { %v962_v46 = vld [vmem:[#allocation3 + $0x10] sm:$0xff]  ;;  %v963_v50 = vld [vmem:[#allocation3 + $0x18] sm:$0xff]  ;;  %p3101_p0 = scmp.ne.s32.totalorder %s3099_s27, 0 }
 0x124   : > { %s2961_s15 = scalar_lea.hbm %s3100_s5, %s1783_s22 }
 0x125   : > { %v1026_v28 = vld [vmem:[#allocation4 + $0x10] sm:$0xff] }
 0x1f3   : > { %v608_v11 = vpop.f32.mrb[0].mxu0 }
 0x1f4   : > { %v609_v12 = vadd.f32 %v1766_v10, %v608_v11  ;;  %v1824_v13 = vpop.f32.mrb[1].mxu0 }
 0x1f6   : > { %613 = vst.msk [vmem:[#allocation2] sm:$0xff] %vm612_vm2, %v609_v12  ;;  %625 = vrot.lane.b32.xlu1 %v609_v12, %s2394_s25  ;;  %615 = vrot.lane.b32.xlu0 %v609_v12, %s2395_s13 }
 0x1fa   : > { %620 = vrot.lane.b32.xlu0 %v609_v12, %s2396_s24 }
 0x1fd   : > { %v643_v15 = vld [vmem:[#allocation2] sm:$0xff] }
 0x1fe   : > { %1828 = vmatmul.mubr.msk.f32.vlgmr.msra.gmra.mrb[0].mxu1 %vm612_vm2, %v643_v15 }
 0x1ff   : > { %1831 = vmatpush3.xpose.msk.msra.mxu1 %vm612_vm2, %v648_v14  ;;  %1832 = vmatprep.mubr.msk.f32.mxu1 %vm2392_vm0, %v2393_v1 }
 0x200   : > { %1835 = vmatprep.subr.mxu1 %v2393_v1 }
 0x268   : > { %v626_v16 = vpop.permute.xlu1 %625  ;;  %v616_v17 = vpop.permute.xlu0 %615 }
 0x269   : > { %629 = vst.msk [vmem:[#allocation2 + $0x18] sm:$0xff] %vm612_vm2, %v626_v16  ;;  %619 = vst.msk [vmem:[#allocation2 + $0x8] sm:$0xff] %vm612_vm2, %v616_v17 }
 0x26c   : > { %v621_v18 = vpop.permute.xlu0 %620 }
 0x26d   : > { %624 = vst.msk [vmem:[#allocation2 + $0x10] sm:$0xff] %vm612_vm2, %v621_v18 }
 0x270   : > { %v644_v20 = vld [vmem:[#allocation2 + $0x8] sm:$0xff]  ;;  %v646_v23 = vld [vmem:[#allocation2 + $0x18] sm:$0xff] }
 0x271   : > { %1833 = vmatmul.mubr.msk.f32.vlgmr.msra.gmra.mrb[2].mxu1 %vm612_vm2, %v644_v20 }
 0x272   : > { %1836 = vmatpush3.xpose.msk.msra.mxu1 %vm612_vm2, %v649_v19  ;;  %1837 = vmatprep.mubr.msk.f32.mxu1 %vm2392_vm0, %v2393_v1 }
 0x273   : > { %1840 = vmatprep.subr.mxu1 %v2393_v1 }
 0x274   : > { %v645_v22 = vld [vmem:[#allocation2 + $0x10] sm:$0xff] }
 0x275   : > { %1838 = vmatmul.mubr.msk.f32.vlgmr.msra.gmra.mrb[4].mxu1 %vm612_vm2, %v645_v22 }
 0x276   : > { %1841 = vmatpush3.xpose.msk.msra.mxu1 %vm612_vm2, %v650_v21  ;;  %1842 = vmatprep.mubr.msk.f32.mxu1 %vm2392_vm0, %v2393_v1 }
 0x277   : > { %1850 = vmatprep.subr.mxu1 %v2393_v1 }
 0x279   : > { %1843 = vmatmul.mubr.msk.f32.vlgmr.msra.gmra.mrb[6].mxu1 %vm612_vm2, %v646_v23 }
 0x27a   : > { %1852 = vmatprep.mubr.msk.f32.mxu1 %vm2392_vm0, %v2393_v1  ;;  %1851 = vmatpush3.msra.mxu1 %v652_v56 }
 0x27b   : > { %1860 = vmatprep.subr.mxu1 %v2393_v1 }
 0x2d1   : > { %v728_v25 = vpop.f32.mrb[0].mxu1 }
 0x2d2   : > { %v1829_v26 = vpop.f32.mrb[1].mxu1  ;;  %v964_v27 = vsel %vm612_vm2, %v728_v25, -inf }
 0x2d3   : > { %965 = vmax.xlane.f32.xlu1 %v964_v27 }
 0x344   : > { %v804_v29 = vpop.f32.mrb[2].mxu1 }
 0x345   : > { %v1834_v30 = vpop.f32.mrb[3].mxu1  ;;  %v967_v31 = vsel %vm612_vm2, %v804_v29, -inf }
 0x346   : > { %968 = vmax.xlane.f32.xlu0 %v967_v31 }
 0x348   : > { %v880_v32 = vpop.f32.mrb[4].mxu1 }
 0x349   : > { %v1839_v33 = vpop.f32.mrb[5].mxu1  ;;  %v970_v34 = vsel %vm612_vm2, %v880_v32, -inf }
 0x34a   : > { %971 = vmax.xlane.f32.xlu0 %v970_v34 }
 0x34c   : > { %v956_v35 = vpop.f32.mrb[6].mxu1 }
 0x34d   : > { %v1844_v36 = vpop.f32.mrb[7].mxu1  ;;  %v973_v37 = vsel %vm612_vm2, %v956_v35, -inf }
 0x34e   : > { %974 = vmax.xlane.f32.xlu1 %v973_v37  ;;  %v1024_v37 = vld [vmem:[#allocation4] sm:$0xff] }
 0x360   : > { %v966_v39 = vpop.xlane.xlu1 %965 }
 0x361   : > { %v2905_v40 = vmax.f32 %v2902_v38, %v966_v39 }
 0x363   : > { %v980_v41 = vsub.f32 %v2902_v38, %v2905_v40  ;;  %1381 = vst.msk [vmem:[#allocation3] sm:$0xff] %vm630_vm3, %v2905_v40  ;;  %994 = vperm.xlu0 %2019, %v2905_v40  }
 0x365   : > { %v984_v24 = vmul.f32 1.442695, %v980_v41 }
 0x3d3   : > { %v969_v44 = vpop.xlane.xlu0 %968 }
 0x3d4   : > { %v977_v45 = vmax.f32 %v961_v43, %v969_v44 }
 0x3d6   : > { %v981_v47 = vsub.f32 %v961_v43, %v977_v45  ;;  %1382 = vst.msk [vmem:[#allocation3 + $0x8] sm:$0xff] %vm630_vm3, %v977_v45  ;;  %999 = vperm.xlu1 %2020, %v977_v45  }
 0x3d7   : > { %v972_v48 = vpop.xlane.xlu0 %971 }
 0x3d8   : > { %v978_v49 = vmax.f32 %v962_v46, %v972_v48  ;;  %v986_v18 = vmul.f32 1.442695, %v981_v47 }
 0x3da   : > { %v982_v51 = vsub.f32 %v962_v46, %v978_v49  ;;  %1383 = vst.msk [vmem:[#allocation3 + $0x10] sm:$0xff] %vm630_vm3, %v978_v49  ;;  %1004 = vperm.xlu1 %2020, %v978_v49  }
 0x3db   : > { %v975_v52 = vpop.xlane.xlu1 %974 }
 0x3dc   : > { %v979_v53 = vmax.f32 %v963_v50, %v975_v52  ;;  %v988_v16 = vmul.f32 1.442695, %v982_v51 }
 0x3de   : > { %v983_v54 = vsub.f32 %v963_v50, %v979_v53  ;;  %1384 = vst.msk [vmem:[#allocation3 + $0x18] sm:$0xff] %vm630_vm3, %v979_v53  ;;  %1009 = vperm.xlu1 %2020, %v979_v53   ;;  %v1054_v50 = vld [vmem:[#allocation5 + $0x8] sm:$0xff]  ;;  %v1055_v53 = vld [vmem:[#allocation5 + $0x10] sm:$0xff] }
 0x3e0   : > { %v990_v19 = vmul.f32 1.442695, %v983_v54 }
 0x3e2   : > { %v995_v55 = vpop.permute.xlu0 %994 }
 0x3e3   : > { %v1012_v57 = vsub.f32 %v728_v25, %v995_v55  ;;  %v1025_v25 = vld [vmem:[#allocation4 + $0x8] sm:$0xff] }
 0x3e5   : > { %v1016_v58 = vmul.f32 1.442695, %v1012_v57 }
 0x3e7   : > { %2021 = vpow2.f32 %v1016_v58 }
 0x3f1   : > { %v2022_v60 = vpop.eup %2021 }
 0x3f2   : > { %1848 = vmatmul.mubr.msk.f32.vlgmr.msra.gmra.mrb[2].mxu0 %vm612_vm2, %v2022_v60  ;;  %v1032_v17 = vsel %vm612_vm2, %v2022_v60, 0.0 }
 0x3f3   : > { %1856 = vmatpush3.msra.mxu0 %v653_v59  ;;  %1857 = vmatprep.mubr.msk.f32.mxu0 %vm2392_vm0, %v2393_v1  ;;  %v1056_v59 = vld [vmem:[#allocation5 + $0x18] sm:$0xff] }
 0x3f4   : > { %1882 = vmatprep.subr.bf16.mxu0 %v2391_v0 }
 0x455   : > { %v1000_v61 = vpop.permute.xlu1 %999 }
 0x456   : > { %v1013_v62 = vsub.f32 %v804_v29, %v1000_v61 }
 0x458   : > { %v1018_v63 = vmul.f32 1.442695, %v1013_v62 }
 0x459   : > { %v1005_v2 = vpop.permute.xlu1 %1004 }
 0x45a   : > { %2023 = vpow2.f32 %v1018_v63  ;;  %v1014_v3 = vsub.f32 %v880_v32, %v1005_v2  ;;  %v1027_v32 = vld [vmem:[#allocation4 + $0x18] sm:$0xff] }
 0x45c   : > { %v1020_v4 = vmul.f32 1.442695, %v1014_v3 }
 0x45d   : > { %v1010_v5 = vpop.permute.xlu1 %1009 }
 0x45e   : > { %2025 = vpow2.f32 %v1020_v4  ;;  %v1015_v6 = vsub.f32 %v956_v35, %v1010_v5 }
 0x460   : > { %v1022_v7 = vmul.f32 1.442695, %v1015_v6  ;;  %v1445_v6 = vld [vmem:[#allocation17] sm:$0xff] }
 0x462   : > { %2027 = vpow2.f32 %v1022_v7  ;;  %v1446_v7 = vld [vmem:[#allocation17 + $0x8] sm:$0xff] }
 0x463   : > { %2029 = vpow2.f32 %v988_v16 }
 0x464   : > { %v2024_v10 = vpop.eup %2023  ;;  %2031 = vpow2.f32 %v986_v18 }
 0x465   : > { %1853 = vmatmul.mubr.msk.f32.vlgmr.msra.gmra.mrb[8].mxu1 %vm612_vm2, %v2024_v10  ;;  %v1035_v11 = vsel %vm612_vm2, %v2024_v10, 0.0  ;;  %2033 = vpow2.f32 %v990_v19  ;;  %v1447_v10 = vld [vmem:[#allocation17 + $0x10] sm:$0xff]  ;;  %v1053_v19 = vld [vmem:[#allocation5] sm:$0xff] }
 0x466   : > { %1036 = vadd.xlane.f32.xlu1 %v1035_v11  ;;  %1861 = vmatpush3.msra.mxu1 %v654_v9  ;;  %2035 = vpow2.f32 %v984_v24  ;;  %v1883_v9 = vpack.c.bf16 %v1446_v7, %v1445_v6  ;;  %v1448_v11 = vld [vmem:[#allocation17 + $0x18] sm:$0xff] }
 0x467   : > { %1862 = vmatprep.mubr.msk.f32.mxu1 %vm2392_vm0, %v2393_v1 }
 0x468   : > { %v2026_v12 = vpop.eup %2025 }
 0x469   : > { %1858 = vmatmul.mubr.msk.f32.vlgmr.msra.gmra.mrb[4].mxu0 %vm612_vm2, %v2026_v12  ;;  %v1038_v13 = vsel %vm612_vm2, %v2026_v12, 0.0  ;;  %v1886_v12 = vpack.c.bf16 %v1448_v11, %v1447_v10 }
 0x46a   : > { %1039 = vadd.xlane.f32.xlu0 %v1038_v13  ;;  %1873 = vmatprep.mubr.msk.f32.mxu0 %vm2392_vm0, %v2393_v1 }
 0x46b   : > { %1884 = vmatpush3.bf16.msra.mxu0 %v1883_v9 }
 0x46c   : > { %v2028_v14 = vpop.eup %2027  ;;  %1885 = vmatprep.subr.bf16.mxu0 %v2391_v0 }
 0x46d   : > { %1863 = vmatmul.mubr.msk.f32.vlgmr.msra.gmra.mrb[10].mxu1 %vm612_vm2, %v2028_v14  ;;  %v1041_v15 = vsel %vm612_vm2, %v2028_v14, 0.0  ;;  %v2030_v20 = vpop.eup %2029 }
 0x46e   : > { %1042 = vadd.xlane.f32.xlu1 %v1041_v15  ;;  %v2032_v21 = vpop.eup %2031  ;;  %v1030_v30 = vmul.f32 %v2030_v20, %v1026_v28 }
 0x46f   : > { %v2034_v1 = vpop.eup %2033  ;;  %v1029_v26 = vmul.f32 %v2032_v21, %v1025_v25  ;;  %1887 = vmatpush3.bf16.msra.mxu0 %v1886_v12 }
 0x470   : > { %v1031_v34 = vmul.f32 %v2034_v1, %v1027_v32  ;;  %v2036_v35 = vpop.eup %2035 }
 0x471   : > { %v1028_v40 = vmul.f32 %v2036_v35, %v1024_v37 }
 0x472   : > { %1033 = vadd.xlane.f32.xlu1 %v1032_v17 }
 0x480   : > { %1069 = vperm.xlu0 %2019, %v2030_v20  }
 0x483   : > { %1064 = vperm.xlu1 %2020, %v2032_v21  }
 0x487   : > { %1074 = vperm.xlu1 %2020, %v2034_v1  }
 0x4c5   : > { %v2936_v22 = vpop.f32.mrb[2].mxu0 }
 0x4c6   : > { %v1849_v23 = vpop.f32.mrb[3].mxu0 }
 0x4f3   : > { %v1037_v27 = vpop.xlane.xlu1 %1036 }
 0x4f4   : > { %v1045_v29 = vadd.f32 %v1037_v27, %v1029_v26  ;;  %v1442_v27 = vld [vmem:[%s440_s29] sm:$0xff]  ;;  %s2277_s29 = scalar_lea.vmem %s2963_s21, 128 }
 0x4f5   : > { %p2278_p9 = scmp.ne.s32.totalorder %s2963_s21, %s2277_s29  ;;  %p2285_p7 = scmp.lt.s32.totalorder %s2283_s20, %s2277_s29 }
 0x4f6   : > { %1050 = vst.msk [vmem:[#allocation4 + $0x8] sm:$0xff] %vm630_vm3, %v1045_v29 }
 0x4f7   : > { %v1040_v31 = vpop.xlane.xlu0 %1039  ;;  %p2279_p3 = pnand %p2278_p9, %p3101_p0  ;;  %p2286_p8 = por %p2285_p7, %p2284_p5 }
 0x4f8   : > { %v1046_v33 = vadd.f32 %v1040_v31, %v1030_v30  ;;  %v1443_v31 = vmul.f32 %v1442_v27, %v2843_v8 }
 0x4f9   : > { %p2280_p2 = pneg %p2279_p3 }
 0x4fa   : > { %1051 = vst.msk [vmem:[#allocation4 + $0x10] sm:$0xff] %vm630_vm3, %v1046_v33 }
 0x4fb   : > { %v1043_v36 = vpop.xlane.xlu1 %1042  ;;  %p2287_p10 = pnand %p2286_p8, %p2280_p2 }
 0x4fc   : > { %v1047_v38 = vadd.f32 %v1043_v36, %v1031_v34  ;;  %v1780_v36 = vld [vmem:[#allocation18] ss:$0 sm:$0xff] }
 0x4fd   : > { %v1393_v39 = vld [vmem:[#allocation4 + $0x8] sm:$0xff] }
 0x4fe   : > { %1052 = vst.msk [vmem:[#allocation4 + $0x18] sm:$0xff] %vm630_vm3, %v1047_v38  ;;  %2037 = vrcp.f32 %v1393_v39 }
 0x4ff   : > { %v1034_v41 = vpop.xlane.xlu1 %1033  ;;  %v1070_v54 = vpop.permute.xlu0 %1069 }
 0x500   : > { %v1044_v42 = vadd.f32 %v1034_v41, %v1028_v40  ;;  %v1079_v58 = vmul.f32 %v1070_v54, %v1055_v53 }
 0x501   : > { %v1394_v43 = vld [vmem:[#allocation4 + $0x10] sm:$0xff] }
 0x502   : > { %1049 = vst.msk [vmem:[#allocation4] sm:$0xff] %vm630_vm3, %v1044_v42  ;;  %2039 = vrcp.f32 %v1394_v43 }
 0x503   : > { %v1065_v51 = vpop.permute.xlu1 %1064 }
 0x504   : > { %v1078_v52 = vmul.f32 %v1065_v51, %v1054_v50 }
 0x505   : > { %v1395_v44 = vld [vmem:[#allocation4 + $0x18] sm:$0xff] }
 0x506   : > { %2041 = vrcp.f32 %v1395_v44 }
 0x507   : > { %v1075_v60 = vpop.permute.xlu1 %1074 }
 0x508   : > { %v2038_v45 = vpop.eup %2037  ;;  %v1080_v2 = vmul.f32 %v1075_v60, %v1056_v59 }
 0x509   : > { %1407 = vperm.xlu1 %2020, %v2038_v45   ;;  %v1392_v46 = vld [vmem:[#allocation4] sm:$0xff] }
 0x50a   : > { %2043 = vrcp.f32 %v1392_v46 }
 0x50c   : > { %v2040_v47 = vpop.eup %2039 }
 0x50d   : > { %1412 = vperm.xlu1 %2020, %v2040_v47  }
 0x510   : > { %v2042_v48 = vpop.eup %2041 }
 0x511   : > { %1059 = vperm.xlu1 %2020, %v2036_v35   ;;  %1417 = vperm.xlu0 %2019, %v2042_v48  }
 0x514   : > { %v2044_v49 = vpop.eup %2043 }
 0x515   : > { %1402 = vperm.xlu0 %2019, %v2044_v49  }
 0x538   : > { %v1223_v55 = vpop.f32.mrb[8].mxu1 }
 0x539   : > { %v1374_v56 = vadd.f32 %v1223_v55, %v1078_v52  ;;  %v1854_v57 = vpop.f32.mrb[9].mxu1 }
 0x53b   : > { %1378 = vst.msk [vmem:[#allocation5 + $0x8] sm:$0xff] %vm612_vm2, %v1374_v56 }
 0x53c   : > { %v1296_v61 = vpop.f32.mrb[4].mxu0 }
 0x53d   : > { %v1375_v62 = vadd.f32 %v1296_v61, %v1079_v58  ;;  %v1859_v63 = vpop.f32.mrb[5].mxu0 }
 0x53f   : > { %1379 = vst.msk [vmem:[#allocation5 + $0x10] sm:$0xff] %vm612_vm2, %v1375_v62 }
 0x540   : > { %v1369_v3 = vpop.f32.mrb[10].mxu1 }
 0x541   : > { %v1376_v4 = vadd.f32 %v1369_v3, %v1080_v2  ;;  %v1864_v5 = vpop.f32.mrb[11].mxu1 }
 0x542   : > { %v1389_v14 = vld [vmem:[#allocation5 + $0x8] sm:$0xff] }
 0x543   : > { %1380 = vst.msk [vmem:[#allocation5 + $0x18] sm:$0xff] %vm612_vm2, %v1376_v4 }
 0x546   : > { %v1390_v17 = vld [vmem:[#allocation5 + $0x10] sm:$0xff] }
 0x54a   : > { %v1391_v21 = vld [vmem:[#allocation5 + $0x18] sm:$0xff] }
 0x588   : > { %v1408_v13 = vpop.permute.xlu1 %1407 }
 0x589   : > { %v1421_v15 = vmul.f32 %v1408_v13, %v1389_v14 }
 0x58b   : > { %1425 = vrot.lane.b32.xlu1 %v1421_v15, %s2399_s16 }
 0x58c   : > { %v1413_v16 = vpop.permute.xlu1 %1412 }
 0x58d   : > { %v1422_v18 = vmul.f32 %v1413_v16, %v1390_v17 }
 0x58f   : > { %1429 = vrot.lane.b32.xlu0 %v1422_v18, %s2400_s8 }
 0x590   : > { %v1418_v20 = vpop.permute.xlu0 %1417  ;;  %v1060_v1 = vpop.permute.xlu1 %1059 }
 0x591   : > { %v1423_v0 = vmul.f32 %v1418_v20, %v1391_v21  ;;  %v1077_v23 = vmul.f32 %v1060_v1, %v1053_v19 }
 0x593   : > { %v1373_v24 = vadd.f32 %v2936_v22, %v1077_v23  ;;  %1433 = vrot.lane.b32.xlu1 %v1423_v0, %s2401_s26 }
 0x594   : > { %v1403_v25 = vpop.permute.xlu0 %1402 }
 0x595   : > { %1377 = vst.msk [vmem:[#allocation5] sm:$0xff] %vm612_vm2, %v1373_v24 }
 0x59c   : > { %v1388_v26 = vld [vmem:[#allocation5] sm:$0xff] }
 0x59d   : > { %v1420_v29 = vmul.f32 %v1403_v25, %v1388_v26 }
 0x5fd   : > { %v1426_v28 = vpop.permute.xlu1 %1425 }
 0x5fe   : > { %v1436_v32 = vsel %vm612_vm2, %v1420_v29, %v1426_v28 }
 0x601   : > { %v1430_v30 = vpop.permute.xlu0 %1429 }
 0x602   : > { %v1438_v22 = vsel %vm1437_vm4, %v1436_v32, %v1430_v30 }
 0x605   : > { %v1434_v33 = vpop.permute.xlu1 %1433 }
 0x606   : > { %v1440_v34 = vsel %vm1439_vm5, %v1438_v22, %v1434_v33 }
 0x607   : > { %v1444_v35 = vadd.f32 %v1443_v31, %v1440_v34 }
 0x609   : > { %1874 = vmatmul.mubr.msk.f32.vlgmr.msra.gmra.mrb[6].mxu0 %vm538_vm1, %v1444_v35 }
 0x6dc   : > { %v1526_v37 = vpop.f32.mrb[6].mxu0 }
 0x6dd   : > { %v1527_v38 = vadd.f32 %v1780_v36, %v1526_v37  ;;  %v1875_v39 = vpop.f32.mrb[7].mxu0 }
 0x6df   : > { %1530 = vst.msk [vmem:[%s521_s11] sm:$0xff] %vm538_vm1, %v1527_v38 }
 0x6e0   : > { %2290 = shalt.err (!%p2287_p10)
}
 0x6e1   : > { %s2291_s4 = scalar_lea.hbm %s2961_s15, 128  ;;  %s2295_s25 = scalar_lea.hbm %s3100_s5, 256 }
 0x6e2   : > { %p2292_p1 = scmp.ne.s32.totalorder %s2961_s15, %s2291_s4  ;;  %p2296_p11 = scmp.lt.u32.totalorder %s2961_s15, %s3100_s5 }
 0x6e3   : > { %p2297_p13 = scmp.lt.u32.totalorder %s2295_s25, %s2291_s4  ;;  %p2299_p9 = scmp.lt.u32.totalorder %s2291_s4, %s2961_s15 }
 0x6e4   : > { %p2293_p6 = pnand %p2292_p1, %p3101_p0 }
 0x6e5   : > { %p2298_p12 = por %p2297_p13, %p2296_p11 }
 0x6e6   : > { %p2294_p4 = pneg %p2293_p6 }
 0x6e7   : > { %p2300_p3 = por %p2299_p9, %p2298_p12 }
 0x6e9   : > { %p2301_p2 = pnand %p2300_p3, %p2294_p4 }
 0x6eb   : > { %2304 = shalt.err (!%p2301_p2)
}
 0x6ec   : > { %1912 = dma.vmem_to_hbm [thread:$0]  (%p3101_p0), %s2963_s21, 128, %s2961_s15, %s1532_s1  }
 0x6ed PF: > { %s3102_s16 = sld [smem:[#allocation28_spill]]  ;;  %s3103_s8 = sld [smem:[#allocation33_spill]] }
 0x6ee   : > { %p3105_p7 = scmp.ge.s32.totalorder %s2379_s10, 2 }
 0x6f3   : > { %s1558_s26 = sand.u32 1, %s3102_s16   ;;  %p3104_p5 = scmp.ne.s32.totalorder %s3103_s8, 0 }
 0x6f4   : > { %s1559_s23 = scalar_lea.sflag [#allocation8], %s1558_s26 }
 0x6f5   : > { %p1941_p8 = pnand %p3105_p7, %p3104_p5 }
 0x6f7   : > { %2354 = dma.done.wait (!%p1941_p8), %s1559_s23, 128  }
 0x6f8   : > { %2356 = vsyncadd (!%p1941_p8), %s1559_s23, 4294967168  ;;  %s32_s10 = sadd.s32 1, %s2379_s10   ;;  %s3106_s22 = sld [smem:[#allocation29_spill]] }
 0x6f9   : > { %p29_p10 = scmp.ge.s32.totalorder %s32_s10, 4   ;;  %s3107_s29 = sld [smem:[#allocation36_spill]] }
 0x6fa   : > { %s3108_s11 = sld [smem:[#allocation34_spill]]  ;;  %s3109_s27 = smov %s2363_s28 }
 0x6fb   : > { %s3111_s30 = smov %s2375_s9  ;;  %31 = sbr.rel (!%p29_p10) target bundleno = 17 (0x11), region = 161 }
 0x6fe   : > { %s3110_s28 = smov %s3106_s22 }
 0x700   : > { %s3112_s9 = smov %s3108_s11 }
 0x702   :  { %1564 = vsyncpa [#allocation7], 1 }
 0x703   :  { %1566 = vsyncpa [#allocation7 + $0x1], 1 }
 0x704   :  { %1567 = vsyncpa [#allocation10], 1 }
 0x705   :  { %1569 = vsyncpa [#allocation10 + $0x1], 1 }
 0x706   :  { %1570 = vsyncpa [#allocation13], 1 }
 0x707   :  { %1572 = vsyncpa [#allocation13 + $0x1], 1 }
 0x708   :  { %1573 = vsyncpa [#allocation16], 1 }
 0x709   :  { %1574 = vsyncpa [#allocation19], 1 }
 0x70a   :  { %1575 = vsyncpa [#allocation8], 1 }
 0x70b   :  { %1577 = vsyncpa [#allocation8 + $0x1], 1 }

// kernel: tpu_custom_call.1
= control target key start
LH: loop header
LB: loop body
LE: loop exit
PB: predicated region body
PF: predicated region fallthrough
CT: control target
= control target key end

     0   :  { %s3011_s0 = inlined_call_operand.hbm [shape: f32[2,8,32], index: 0, kind: input, shape index: {}]   ;;  %s3012_s1 = inlined_call_operand.hbm [shape: f32[2,8,32], index: 1, kind: input, shape index: {}]   ;;  %s3013_s2 = inlined_call_operand.hbm [shape: f32[2,4,8,8], index: 2, kind: input, shape index: {}]   ;;  %s3014_s3 = inlined_call_operand.hbm [shape: f32[2,4,8,8], index: 3, kind: input, shape index: {}]   ;;  %s3015_s4 = inlined_call_operand.hbm [shape: f32[32,32], index: 4, kind: input, shape index: {}]   ;;  %s3016_s5 = inlined_call_operand.hbm [shape: f32[1,32], index: 5, kind: input, shape index: {}]   ;;  %s3017_s6 = inlined_call_operand.hbm [shape: f32[32,32], index: 6, kind: input, shape index: {}]   ;;  %s3018_s7 = inlined_call_operand.hbm [shape: f32[1,32], index: 7, kind: input, shape index: {}]   ;;  %s3019_s8 = inlined_call_operand.hbm [shape: f32[2,8,32], index: 8, kind: output, shape index: {}]  }
   0x1   :  { %3050 = sst [smem:[#allocation37_spill]] %s3012_s1 }
   0x2   :  { %3051 = sst [smem:[#allocation38_spill]] %s3015_s4 }
   0x3   :  { %3052 = sst [smem:[#allocation39_spill]] %s3016_s5 }
   0x4   :  { %3053 = sst [smem:[#allocation40_spill]] %s3019_s8 }
   0x5   :  { %13 = vsyncpa [#allocation7], 0 }
   0x6   :  { %15 = vsyncpa [#allocation7 + $0x1], 0 }
   0x7   :  { %16 = vsyncpa [#allocation10], 0 }
   0x8   :  { %18 = vsyncpa [#allocation10 + $0x1], 0 }
   0x9   :  { %19 = vsyncpa [#allocation13], 0 }
   0xa   :  { %21 = vsyncpa [#allocation13 + $0x1], 0 }
   0xb   :  { %22 = vsyncpa [#allocation16], 0 }
   0xc   :  { %23 = vsyncpa [#allocation19], 0 }
   0xd   :  { %24 = vsyncpa [#allocation8], 0 }
   0xe   :  { %26 = vsyncpa [#allocation8 + $0x1], 0  ;;  %s2448_s27 = smov 0   ;;  %s2450_s28 = smov 0  }
   0xf   :  { %s2452_s29 = smov 0   ;;  %s2454_s30 = smov 0  }
  0x10   :  { %s2456_s9 = smov 0   ;;  %s2458_s10 = smov 0  }
  0x11 LB: > { %3054 = sst [smem:[#allocation28_spill]] %s2359_s27  ;;  %s2479_s11 = sadd.s32 4294967295, %s2379_s10   ;;  %s2379_s10 = sphi %s2458_s10, %s32_s10   ;;  %s2375_s9 = sphi %s2456_s9, %s3112_s9   ;;  %s2371_s30 = sphi %s2454_s30, %s3111_s30   ;;  %s2367_s29 = sphi %s2452_s29, %s3107_s29   ;;  %s2363_s28 = sphi %s2450_s28, %s3110_s28   ;;  %s2359_s27 = sphi %s2448_s27, %s3109_s27  }
  0x12   : > { %3055 = sst [smem:[#allocation29_spill]] %s2367_s29  ;;  %s1739_s12 = sadd.s32 4294967294, %s2379_s10  }
  0x13   : > { %3056 = sst [smem:[#allocation30_spill]] %s2371_s30  ;;  %p73_p0 = scmp.ne.s32.totalorder %s2363_s28, %s2359_s27 }
  0x14   : > { %3057 = sst [smem:[#allocation31_spill]] %s2479_s11  ;;  %p3020_p1 = scmp.eq.s32.totalorder %s2479_s11, 0 }
  0x15   : > { %p273_p3 = scmp.eq.s32.totalorder %s1739_s12, 1  ;;  %p1740_p5 = scmp.ge.s32.totalorder %s2379_s10, 1 }
  0x16   : > { %p2488_p4 = por %p3020_p1, %p73_p0  ;;  %p280_p7 = scmp.lt.s32.totalorder %s2379_s10, 3 }
  0x17   : > { %p2493_p6 = por %p273_p3, %p73_p0  ;;  %s2381_s16 = smov [#allocation14]  }
  0x18   : > { %s3058_s13 = scalar_select %p2488_p4, 1, 0 }
  0x19   : > { %s3060_s14 = scalar_select %p2493_p6, 1, 0 }
  0x1a   : > { %3059 = sst [smem:[#allocation32_spill]] %s3058_s13  ;;  %p2498_p8 = pnand %p1740_p5, %p280_p7 }
  0x1b   : > { %3061 = sst [smem:[#allocation33_spill]] %s3060_s14  ;;  %s292_s17 = sshll.u32 %s2381_s16, 4  ;;  %s2502_s17 = int_to_ptr.vmem [resolvable:$true] %s292_s17 }
  0x1c   : > { %s3062_s15 = scalar_select %p2498_p8, 1, 0 }
  0x1d   : > { %p1914_p9 = pneg %p2498_p8  ;;  %s2382_s19 = smov [#allocation15]  }
  0x1e   : > { %s306_s20 = sshll.u32 %s2382_s19, 4  ;;  %s3064_s4 = sld [smem:[#allocation38_spill]]  ;;  %s2513_s20 = int_to_ptr.vmem [resolvable:$true] %s306_s20 }
  0x1f   : > { %p2509_p11 = pnand %p1914_p9, %p3020_p1 }
  0x21   : > { %s3063_s18 = scalar_select %p2509_p11, 1, 0 }
  0x22   : > { %p2523_p13 = pneg %p2509_p11 }
  0x24   : > { %s2045_s23 = scalar_lea.hbm %s3064_s4, 512 }
  0x25   : > { %p2046_p12 = scmp.ne.s32.totalorder %s3064_s4, %s2045_s23  ;;  %p2052_p5 = scmp.lt.u32.totalorder %s2045_s23, %s3064_s4 }
  0x26   : > { %s3065_s26 = scalar_select %p2523_p13, 1, 0 }
  0x27   : > { %p2048_p0 = pnand %p2523_p13, %p2046_p12 }
  0x29   : > { %p2049_p3 = pneg %p2048_p0 }
  0x2b   : > { %p2054_p7 = pnand %p2052_p5, %p2049_p3 }
  0x2d   : > { %2057 = shalt.err (!%p2054_p7)
}
  0x2e   : > { %s2058_s19 = scalar_lea.vmem %s2502_s17, 512  ;;  %p2066_p2 = scmp.lt.s32.totalorder %s2502_s17, %s2502_s17 }
  0x2f   : > { %p2059_p9 = scmp.ne.s32.totalorder %s2502_s17, %s2058_s19  ;;  %p2067_p6 = scmp.lt.s32.totalorder %s2058_s19, %s2058_s19 }
  0x31   : > { %p2061_p10 = pnand %p2059_p9, %p2523_p13  ;;  %p2068_p12 = por %p2067_p6, %p2066_p2 }
  0x33   : > { %p2062_p1 = pneg %p2061_p10 }
  0x35   : > { %p2069_p0 = pnand %p2068_p12, %p2062_p1 }
  0x37   : > { %2072 = shalt.err (!%p2069_p0)
}
  0x38   : > { %s3024_s21 = smov 128   ;;  %s3026_s22 = smov 8  }
  0x39   : > { %1917 = dma.hbm_to_vmem [thread:$0]  (!%p2509_p11), %s3064_s4, 512, %s2502_s17, [#allocation13], %s3024_s21, %s3024_s21, %s3026_s22  }
  0x3a   : > { %s3066_s5 = sld [smem:[#allocation39_spill]] }
  0x40   : > { %s2073_s16 = scalar_lea.hbm %s3066_s5, 16 }
  0x41   : > { %p2074_p1 = scmp.ne.s32.totalorder %s3066_s5, %s2073_s16  ;;  %p2080_p10 = scmp.lt.u32.totalorder %s2073_s16, %s3066_s5 }
  0x43   : > { %p2076_p2 = pnand %p2074_p1, %p2523_p13 }
  0x45   : > { %p2077_p6 = pneg %p2076_p2 }
  0x47   : > { %p2082_p3 = pnand %p2080_p10, %p2077_p6 }
  0x49   : > { %2085 = shalt.err (!%p2082_p3)
}
  0x4a   : > { %s2086_s17 = scalar_lea.vmem %s2513_s20, 16  ;;  %s2093_s14 = scalar_lea.vmem %s2513_s20, 32 }
  0x4b   : > { %p2087_p5 = scmp.ne.s32.totalorder %s2513_s20, %s2086_s17  ;;  %p2094_p12 = scmp.lt.s32.totalorder %s2513_s20, %s2513_s20 }
  0x4c   : > { %p2095_p0 = scmp.lt.s32.totalorder %s2093_s14, %s2086_s17 }
  0x4d   : > { %p2089_p7 = pnand %p2087_p5, %p2523_p13 }
  0x4e   : > { %p2096_p1 = por %p2095_p0, %p2094_p12 }
  0x4f   : > { %p2090_p9 = pneg %p2089_p7 }
  0x51   : > { %p2097_p2 = pnand %p2096_p1, %p2090_p9 }
  0x53   : > { %2100 = shalt.err (!%p2097_p2)
}
  0x54   : > { %1920 = dma.hbm_to_vmem [thread:$0]  (!%p2509_p11), %s3066_s5, 16, %s2513_s20, [#allocation16]  }
  0x55   : > { %s51_s23 = sadd.s32 1, %s2375_s9  ;;  %s60_s24 = sadd.s32 1, %s2367_s29 }
  0x56   : > { %p53_p6 = scmp.ge.s32.totalorder %s51_s23, 2  ;;  %p67_p10 = scmp.ne.s32.totalorder %s2367_s29, %s2363_s28 }
  0x57   : > { %p68_p3 = scmp.eq.s32.totalorder %s2379_s10, 0  ;;  %p1948_p5 = scmp.lt.s32.totalorder %s2379_s10, 2 }
  0x58   : > { %s3114_s23 = smov (%p53_p6, %s51_s23), 0  ;;  %p3068_p9 = scmp.eq.s32.totalorder %s2479_s11, 1 }
  0x59   : > { %3067 = sst [smem:[#allocation34_spill]] %s3114_s23  ;;  %p69_p7 = por %p68_p3, %p67_p10 }
  0x5a   : > { %p2581_p12 = por %p3068_p9, %p67_p10  ;;  %s55_s20 = ssub.s32 %s2375_s9, %s3114_s23 }
  0x5b   : > { %s2588_s12 = sand.u32 1, %s2367_s29   ;;  %p58_p0 = scmp.eq.s32.totalorder %s55_s20, 0 }
  0x5c   : > { %s3069_s25 = scalar_select %p2581_p12, 1, 0 }
  0x5d   : > { %s3029_s16 = sshll.u32 %s2588_s12, 3  ;;  %s3030_s19 = sshll.u32 %s2375_s9, 7 }
  0x5e   : > { %3070 = sst [smem:[#allocation35_spill]] %s3069_s25  ;;  %p2592_p1 = pnand %p1948_p5, %p69_p7 }
  0x5f   : > { %s2597_s14 = scalar_select %p58_p0, %s2367_s29, %s60_s24  }
  0x60   : > { %s3071_s17 = scalar_select %p2592_p1, 1, 0 }
  0x61   : > { %3072 = sst [smem:[#allocation36_spill]] %s2597_s14  ;;  %s3033_s8 = sand.u32 1, %s2379_s10  }
  0x62   : > { %s3073_s1 = sld [smem:[#allocation37_spill]]  ;;  %s364_s20 = scalar_lea.vmem [#allocation9], %s3029_s16 }
  0x63   : > { %s372_s4 = sshll.u32 %s364_s20, 4  ;;  %s2614_s24 = scalar_lea.sflag [#allocation10], %s3033_s8  ;;  %s2609_s4 = int_to_ptr.vmem [resolvable:$true] %s372_s4 }
  0x64   : > { %p2620_p6 = pneg %p2592_p1 }
  0x66   : > { %s3074_s21 = scalar_select %p2620_p6, 1, 0 }
  0x68   : > { %s2605_s22 = scalar_lea.hbm %s3073_s1, %s3030_s19  ;;  %s2106_s20 = scalar_lea.hbm %s3073_s1, 256 }
  0x69   : > { %s2101_s23 = scalar_lea.hbm %s2605_s22, 128  ;;  %p2107_p5 = scmp.lt.u32.totalorder %s2605_s22, %s3073_s1 }
  0x6a   : > { %p2102_p2 = scmp.ne.s32.totalorder %s2605_s22, %s2101_s23  ;;  %p2108_p7 = scmp.lt.u32.totalorder %s2106_s20, %s2101_s23 }
  0x6b   : > { %p2110_p0 = scmp.lt.u32.totalorder %s2101_s23, %s2605_s22 }
  0x6c   : > { %p2104_p10 = pnand %p2620_p6, %p2102_p2  ;;  %p2109_p9 = por %p2108_p7, %p2107_p5 }
  0x6e   : > { %p2105_p3 = pneg %p2104_p10  ;;  %p2111_p12 = por %p2110_p0, %p2109_p9 }
  0x70   : > { %p2112_p4 = pnand %p2111_p12, %p2105_p3 }
  0x72   : > { %2115 = shalt.err (!%p2112_p4)
}
  0x73   : > { %s2116_s8 = scalar_lea.vmem %s2609_s4, 128  ;;  %s2385_s16 = smov [#allocation9]  }
  0x74   : > { %p2117_p2 = scmp.ne.s32.totalorder %s2609_s4, %s2116_s8  ;;  %s2121_s27 = sshll.u32 %s2385_s16, 4  ;;  %s2122_s27 = int_to_ptr.vmem [resolvable:$false] %s2121_s27 }
  0x75   : > { %s2123_s5 = scalar_lea.vmem %s2122_s27, 256  ;;  %p2124_p11 = scmp.lt.s32.totalorder %s2609_s4, %s2122_s27 }
  0x76   : > { %p2119_p10 = pnand %p2117_p2, %p2620_p6  ;;  %p2125_p13 = scmp.lt.s32.totalorder %s2123_s5, %s2116_s8 }
  0x78   : > { %p2120_p8 = pneg %p2119_p10  ;;  %p2126_p5 = por %p2125_p13, %p2124_p11 }
  0x7a   : > { %p2127_p7 = pnand %p2126_p5, %p2120_p8 }
  0x7c   : > { %2130 = shalt.err (!%p2127_p7)
}
  0x7d   : > { %1933 = dma.hbm_to_vmem [thread:$0]  (!%p2592_p1), %s2605_s22, 128, %s2609_s4, %s2614_s24  }
  0x7e   : > { %s3075_s19 = sshll.u32 %s2588_s12, 5  ;;  %s2386_s1 = smov [#allocation17]  }
  0x7f   : > { %s383_s20 = scalar_lea.vmem [#allocation11], %s3075_s19  ;;  %s3076_s8 = smov %s3075_s19 }
  0x80   : > { %s391_s16 = sshll.u32 %s383_s20, 4  ;;  %s405_s27 = scalar_lea.vmem [#allocation12], %s3076_s8  ;;  %s2647_s16 = int_to_ptr.vmem [resolvable:$true] %s391_s16 }
  0x81   : > { %s413_s5 = sshll.u32 %s405_s27, 4  ;;  %s316_s14 = sshll.u32 %s2386_s1, 4  ;;  %s2651_s5 = int_to_ptr.vmem [resolvable:$true] %s413_s5  ;;  %s317_s14 = int_to_ptr.vmem [resolvable:$true] %s316_s14 }
  0x82   : > { %s2131_s30 = scalar_lea.hbm %s3017_s6, 512  ;;  %p3077_p8 = scmp.ne.s32.totalorder %s3065_s26, 0 }
  0x83   : > { %p2132_p4 = scmp.ne.s32.totalorder %s3017_s6, %s2131_s30  ;;  %p2138_p12 = scmp.lt.u32.totalorder %s2131_s30, %s3017_s6 }
  0x85   : > { %p2134_p11 = pnand %p2132_p4, %p3077_p8 }
  0x87   : > { %p2135_p13 = pneg %p2134_p11 }
  0x89   : > { %p2140_p3 = pnand %p2138_p12, %p2135_p13 }
  0x8b   : > { %2143 = shalt.err (!%p2140_p3)
}
  0x8c   : > { %s2144_s20 = scalar_lea.vmem %s317_s14, 512  ;;  %p2152_p10 = scmp.lt.s32.totalorder %s317_s14, %s317_s14 }
  0x8d   : > { %p2145_p9 = scmp.ne.s32.totalorder %s317_s14, %s2144_s20  ;;  %p2153_p5 = scmp.lt.s32.totalorder %s2144_s20, %s2144_s20 }
  0x8f   : > { %p2147_p0 = pnand %p2145_p9, %p3077_p8  ;;  %p2154_p7 = por %p2153_p5, %p2152_p10 }
  0x91   : > { %p2148_p2 = pneg %p2147_p0 }
  0x93   : > { %p2155_p1 = pnand %p2154_p7, %p2148_p2 }
  0x95   : > { %2158 = shalt.err (!%p2155_p1)
}
  0x96   : > { %p3078_p4 = scmp.ne.s32.totalorder %s3063_s18, 0  ;;  %s3079_s1 = smov 8  }
  0x97   : > { %s3080_s29 = smov 128   ;;  %s2387_s25 = smov [#allocation18]  }
  0x98   : > { %1923 = dma.hbm_to_vmem [thread:$0]  (!%p3078_p4), %s3017_s6, 512, %s317_s14, [#allocation16], %s3080_s29, %s3080_s29, %s3079_s1  }
  0x99   : > { %s330_s8 = sshll.u32 %s2387_s25, 4  ;;  %s2159_s22 = scalar_lea.hbm %s3018_s7, 16  ;;  %s331_s8 = int_to_ptr.vmem [resolvable:$true] %s330_s8 }
  0x9a   : > { %p2160_p1 = scmp.ne.s32.totalorder %s3018_s7, %s2159_s22  ;;  %p2166_p12 = scmp.lt.u32.totalorder %s2159_s22, %s3018_s7 }
  0x9c   : > { %p2162_p11 = pnand %p2160_p1, %p3077_p8 }
  0x9e   : > { %p2163_p13 = pneg %p2162_p11 }
  0xa0   : > { %p2168_p3 = pnand %p2166_p12, %p2163_p13 }
  0xa2   : > { %2171 = shalt.err (!%p2168_p3)
}
  0xa3   : > { %s2172_s14 = scalar_lea.vmem %s331_s8, 16  ;;  %s2179_s11 = scalar_lea.vmem %s331_s8, 32 }
  0xa4   : > { %p2173_p9 = scmp.ne.s32.totalorder %s331_s8, %s2172_s14  ;;  %p2180_p10 = scmp.lt.s32.totalorder %s331_s8, %s331_s8 }
  0xa5   : > { %p2181_p5 = scmp.lt.s32.totalorder %s2179_s11, %s2172_s14 }
  0xa6   : > { %p2175_p0 = pnand %p2173_p9, %p3077_p8 }
  0xa7   : > { %p2182_p7 = por %p2181_p5, %p2180_p10 }
  0xa8   : > { %p2176_p2 = pneg %p2175_p0 }
  0xaa   : > { %p2183_p6 = pnand %p2182_p7, %p2176_p2 }
  0xac   : > { %2186 = shalt.err (!%p2183_p6)
}
  0xad   : > { %1926 = dma.hbm_to_vmem [thread:$0]  (!%p3078_p4), %s3018_s7, 16, %s331_s8, [#allocation19]  }
  0xae   : > { %s3081_s13 = sshll.u32 %s2375_s9, 7  ;;  %s3082_s4 = sshll.u32 %s2588_s12, 3 }
  0xaf   : > { %s2697_s27 = scalar_lea.hbm %s3011_s0, %s3081_s13  ;;  %s345_s18 = scalar_lea.vmem [#allocation6], %s3082_s4 }
  0xb0   : > { %s353_s22 = sshll.u32 %s345_s18, 4  ;;  %s3083_s19 = sshll.u32 %s2375_s9, 9  ;;  %s2701_s22 = int_to_ptr.vmem [resolvable:$true] %s353_s22 }
  0xb1   : > { %s2708_s8 = scalar_lea.hbm %s3013_s2, %s3083_s19  ;;  %s342_s11 = scalar_lea.sflag [#allocation7], %s2588_s12 }
  0xb2   : > { %s2187_s30 = scalar_lea.hbm %s2697_s27, 128  ;;  %p3084_p8 = scmp.ne.s32.totalorder %s3074_s21, 0 }
  0xb3   : > { %p2188_p6 = scmp.ne.s32.totalorder %s2697_s27, %s2187_s30  ;;  %s2192_s26 = scalar_lea.hbm %s3011_s0, 256 }
  0xb4   : > { %p2193_p11 = scmp.lt.u32.totalorder %s2697_s27, %s3011_s0  ;;  %p2194_p13 = scmp.lt.u32.totalorder %s2192_s26, %s2187_s30 }
  0xb5   : > { %p2190_p4 = pnand %p2188_p6, %p3084_p8  ;;  %p2196_p3 = scmp.lt.u32.totalorder %s2187_s30, %s2697_s27 }
  0xb6   : > { %p2195_p12 = por %p2194_p13, %p2193_p11 }
  0xb7   : > { %p2191_p1 = pneg %p2190_p4 }
  0xb8   : > { %p2197_p9 = por %p2196_p3, %p2195_p12 }
  0xba   : > { %p2198_p0 = pnand %p2197_p9, %p2191_p1 }
  0xbc   : > { %2201 = shalt.err (!%p2198_p0)
}
  0xbd   : > { %s2202_s12 = scalar_lea.vmem %s2701_s22, 128  ;;  %s2388_s18 = smov [#allocation6]  }
  0xbe   : > { %p2203_p2 = scmp.ne.s32.totalorder %s2701_s22, %s2202_s12  ;;  %s2207_s19 = sshll.u32 %s2388_s18, 4  ;;  %s2208_s19 = int_to_ptr.vmem [resolvable:$false] %s2207_s19 }
  0xbf   : > { %s2209_s20 = scalar_lea.vmem %s2208_s19, 256  ;;  %p2210_p7 = scmp.lt.s32.totalorder %s2701_s22, %s2208_s19 }
  0xc0   : > { %p2205_p10 = pnand %p2203_p2, %p3084_p8  ;;  %p2211_p6 = scmp.lt.s32.totalorder %s2209_s20, %s2202_s12 }
  0xc2   : > { %p2206_p5 = pneg %p2205_p10  ;;  %p2212_p4 = por %p2211_p6, %p2210_p7 }
  0xc4   : > { %p2213_p11 = pnand %p2212_p4, %p2206_p5 }
  0xc6   : > { %2216 = shalt.err (!%p2213_p11)
}
  0xc7   : > { %p3085_p1 = scmp.ne.s32.totalorder %s3071_s17, 0  ;;  %s2217_s14 = scalar_lea.hbm %s2708_s8, 512 }
  0xc8   : > { %p2218_p13 = scmp.ne.s32.totalorder %s2708_s8, %s2217_s14  ;;  %s2222_s13 = scalar_lea.hbm %s3013_s2, 1024 }
  0xc9   : > { %1930 = dma.hbm_to_vmem [thread:$0]  (!%p3085_p1), %s2697_s27, 128, %s2701_s22, %s342_s11  }
  0xca   : > { %p2220_p12 = pnand %p2218_p13, %p3084_p8  ;;  %p2223_p9 = scmp.lt.u32.totalorder %s2708_s8, %s3013_s2 }
  0xcb   : > { %p2224_p0 = scmp.lt.u32.totalorder %s2222_s13, %s2217_s14  ;;  %p2226_p10 = scmp.lt.u32.totalorder %s2217_s14, %s2708_s8 }
  0xcc   : > { %p2221_p3 = pneg %p2220_p12 }
  0xcd   : > { %p2225_p2 = por %p2224_p0, %p2223_p9 }
  0xcf   : > { %p2227_p5 = por %p2226_p10, %p2225_p2 }
  0xd1   : > { %p2228_p7 = pnand %p2227_p5, %p2221_p3 }
  0xd3   : > { %2231 = shalt.err (!%p2228_p7)
}
  0xd4   : > { %s2232_s27 = scalar_lea.vmem %s2647_s16, 512  ;;  %s2389_s22 = smov [#allocation11]  }
  0xd5   : > { %p2233_p6 = scmp.ne.s32.totalorder %s2647_s16, %s2232_s27  ;;  %s2237_s11 = sshll.u32 %s2389_s22, 4  ;;  %s2238_s11 = int_to_ptr.vmem [resolvable:$false] %s2237_s11 }
  0xd6   : > { %s2239_s4 = scalar_lea.vmem %s2238_s11, 1024  ;;  %p2240_p13 = scmp.lt.s32.totalorder %s2647_s16, %s2238_s11 }
  0xd7   : > { %p2235_p4 = pnand %p2233_p6, %p3084_p8  ;;  %p2241_p12 = scmp.lt.s32.totalorder %s2239_s4, %s2232_s27 }
  0xd9   : > { %p2236_p11 = pneg %p2235_p4  ;;  %p2242_p9 = por %p2241_p12, %p2240_p13 }
  0xdb   : > { %p2243_p0 = pnand %p2242_p9, %p2236_p11 }
  0xdd   : > { %2246 = shalt.err (!%p2243_p0)
}
  0xde   : > { %1936 = dma.hbm_to_vmem [thread:$0]  (!%p3085_p1), %s2708_s8, 512, %s2647_s16, %s2614_s24, %s3080_s29, %s3080_s29, %s3079_s1  }
  0xdf   : > { %s3086_s12 = sshll.u32 %s2375_s9, 9  ;;  %s3087_s14 = sand.u32 1, %s2379_s10  }
  0xe0   : > { %s2762_s20 = scalar_lea.hbm %s3014_s3, %s3086_s12  ;;  %s2766_s30 = scalar_lea.sflag [#allocation13], %s3087_s14 }
  0xe1   : > { %s2247_s25 = scalar_lea.hbm %s2762_s20, 512  ;;  %s2252_s16 = scalar_lea.hbm %s3014_s3, 1024 }
  0xe2   : > { %p2248_p3 = scmp.ne.s32.totalorder %s2762_s20, %s2247_s25  ;;  %p2253_p5 = scmp.lt.u32.totalorder %s2762_s20, %s3014_s3 }
  0xe3   : > { %p2254_p7 = scmp.lt.u32.totalorder %s2252_s16, %s2247_s25  ;;  %p2256_p4 = scmp.lt.u32.totalorder %s2247_s25, %s2762_s20 }
  0xe4   : > { %p2250_p2 = pnand %p2248_p3, %p3084_p8 }
  0xe5   : > { %p2255_p6 = por %p2254_p7, %p2253_p5 }
  0xe6   : > { %p2251_p10 = pneg %p2250_p2 }
  0xe7   : > { %p2257_p11 = por %p2256_p4, %p2255_p6 }
  0xe9   : > { %p2258_p13 = pnand %p2257_p11, %p2251_p10 }
  0xeb   : > { %2261 = shalt.err (!%p2258_p13)
}
  0xec   : > { %s2262_s23 = scalar_lea.vmem %s2651_s5, 512  ;;  %s2390_s27 = smov [#allocation12]  }
  0xed   : > { %p2263_p12 = scmp.ne.s32.totalorder %s2651_s5, %s2262_s23  ;;  %s2267_s22 = sshll.u32 %s2390_s27, 4  ;;  %s2268_s22 = int_to_ptr.vmem [resolvable:$false] %s2267_s22 }
  0xee   : > { %s2269_s11 = scalar_lea.vmem %s2268_s22, 1024  ;;  %p2270_p3 = scmp.lt.s32.totalorder %s2651_s5, %s2268_s22 }
  0xef   : > { %p2265_p9 = pnand %p2263_p12, %p3084_p8  ;;  %p2271_p2 = scmp.lt.s32.totalorder %s2269_s11, %s2262_s23 }
  0xf1   : > { %p2266_p0 = pneg %p2265_p9  ;;  %p2272_p5 = por %p2271_p2, %p2270_p3 }
  0xf3   : > { %p2273_p7 = pnand %p2272_p5, %p2266_p0 }
  0xf5   : > { %2276 = shalt.err (!%p2273_p7)
}
  0xf6   : > { %1939 = dma.hbm_to_vmem [thread:$0]  (!%p3085_p1), %s2762_s20, 512, %s2651_s5, %s2766_s30, %s3080_s29, %s3080_s29, %s3079_s1  }
  0xf7   : > { %p3088_p8 = scmp.ne.s32.totalorder %s3062_s15, 0 }
  0xf8   : > { %s3089_s21 = sld [smem:[#allocation32_spill]] (!%p3088_p8)  ;;  %s2796_s4 = sand.u32 (!%p3088_p8), 1, %s2363_s28  }
  0xf9   : > { %425 = sbr.rel (%p3088_p8) target bundleno = 1773 (0x6ed), region = 52  ;;  %s2799_s12 = sshll.u32 (!%p3088_p8), %s2796_s4, 3 }
  0xfa   : > { %s428_s17 = scalar_lea.sflag (!%p3088_p8), [#allocation7], %s2796_s4  ;;  %s431_s18 = scalar_lea.vmem (!%p3088_p8), [#allocation6], %s2799_s12 }
  0xfe   : > { %p3090_p10 = scmp.ne.s32.totalorder (!%p3088_p8), %s3089_s21, 0 }
 0x100   : > { %2330 = dma.done.wait (%p3090_p10), %s428_s17, 128  }
 0x101   : > { %2332 = vsyncadd (%p3090_p10), %s428_s17, 4294967168  ;;  %s3091_s5 = sld [smem:[#allocation31_spill]]  ;;  %s440_s29 = scalar_lea.vmem [#allocation9], %s2799_s12 }
 0x107   : > { %s436_s15 = sand.u32 1, %s3091_s5  }
 0x108   : > { %s437_s1 = scalar_lea.sflag [#allocation10], %s436_s15 }
 0x109   : > { %2334 = dma.done.wait (%p3090_p10), %s437_s1, 640  }
 0x10a   : > { %2336 = vsyncadd (%p3090_p10), %s437_s1, 4294966656  ;;  %s1759_s19 = sshll.u32 %s2796_s4, 5  ;;  %s455_s14 = scalar_lea.sflag [#allocation13], %s436_s15 }
 0x10b   : > { %s2814_s20 = scalar_lea.vmem [#allocation11], %s1759_s19  ;;  %s2816_s30 = scalar_lea.vmem [#allocation12], %s1759_s19 }
 0x10c   : > { %2338 = dma.done.wait (%p3090_p10), %s455_s14, 512  }
 0x10d   : > { %2340 = vsyncadd (%p3090_p10), %s455_s14, 4294966784  ;;  %p3092_p1 = scmp.eq.s32.totalorder %s3091_s5, 0 }
 0x10f   : > { %2342 = dma.done.wait (%p3092_p1), [#allocation13], 512   ;;  %p3093_p6 = pmov %p3092_p1 }
 0x110   : > { %p3094_p4 = pmov %p3092_p1 }
 0x111   : > { %2344 = vsyncadd (%p3093_p6), [#allocation13], 4294966784 }
 0x112   : > { %2346 = dma.done.wait (%p3094_p4), [#allocation16], 528   ;;  %p3095_p11 = pmov %p3092_p1 }
 0x113   : > { %p3096_p13 = pmov %p3092_p1 }
 0x114   : > { %2348 = vsyncadd (%p3095_p11), [#allocation16], 4294966768 }
 0x115   : > { %2350 = dma.done.wait (%p3096_p13), [#allocation19], 16   ;;  %p3097_p12 = pmov %p3092_p1 }
 0x116   : > { %v2391_v0 = vmov 0.0|0.0   ;;  %vm2392_vm0 = vmmov 0   ;;  %v2393_v1 = vmov 0.0   ;;  %v527_v2 = vld [vmem:[#allocation14] sm:$0xff]  ;;  %v528_v3 = vld [vmem:[#allocation14 + $0x8] sm:$0xff]  ;;  %v529_v4 = vld [vmem:[#allocation14 + $0x10] sm:$0xff] }
 0x117   : > { %2352 = vsyncadd (%p3097_p12), [#allocation19], 4294967280  ;;  %1876 = vmatprep.subr.bf16.mxu0 %v2391_v0  ;;  %1822 = vmatprep.mubr.msk.f32.mxu0 %vm2392_vm0, %v2393_v1  ;;  %v1877_v5 = vpack.c.bf16 %v528_v3, %v527_v2  ;;  %v530_v6 = vld [vmem:[#allocation14 + $0x18] sm:$0xff]  ;;  %v2843_v8 = vld [vmem:[%s431_s18] sm:$0xff]  ;;  %vm538_vm1 = vcmask 261120   ;;  %vm612_vm2 = vcmask 64512  }
 0x118   : > { %1825 = vmatprep.subr.mxu1 %v2393_v1  ;;  %1827 = vmatprep.mubr.msk.f32.mxu1 %vm2392_vm0, %v2393_v1  ;;  %v1880_v7 = vpack.c.bf16 %v530_v6, %v529_v4  ;;  %639 = vst.msk [vmem:[#allocation5] sm:$0xff] %vm612_vm2, %v2393_v1  ;;  %640 = vst.msk [vmem:[#allocation5 + $0x8] sm:$0xff] %vm612_vm2, %v2393_v1  ;;  %v647_v9 = vld [vmem:[%s2814_s20] sm:$0xff]  ;;  %s2394_s25 = smov 104   ;;  %s2395_s13 = smov 120   ;;  %v648_v14 = vld [vmem:[%s2814_s20 + $0x8] sm:$0xff] }
 0x119   : > { %1878 = vmatpush3.bf16.msra.mxu0 %v1877_v5  ;;  %641 = vst.msk [vmem:[#allocation5 + $0x10] sm:$0xff] %vm612_vm2, %v2393_v1  ;;  %642 = vst.msk [vmem:[#allocation5 + $0x18] sm:$0xff] %vm612_vm2, %v2393_v1  ;;  %1826 = vmatpush3.xpose.msk.msra.mxu1 %vm612_vm2, %v647_v9  ;;  %v1766_v10 = vld [vmem:[#allocation15] ss:$0 sm:$0xff]  ;;  %s2396_s24 = smov 112   ;;  %v649_v19 = vld [vmem:[%s2814_s20 + $0x10] sm:$0xff] }
 0x11a   : > { %1879 = vmatprep.subr.bf16.mxu0 %v2391_v0  ;;  %1830 = vmatprep.subr.mxu1 %v2393_v1  ;;  %v650_v21 = vld [vmem:[%s2814_s20 + $0x18] sm:$0xff]  ;;  %vm630_vm3 = vcmask 7168   ;;  %v2397_v24 = vmov -inf   ;;  %v2398_v28 = vmov 0   ;;  %v651_v42 = vld [vmem:[%s2816_s30] sm:$0xff]  ;;  %v652_v56 = vld [vmem:[%s2816_s30 + $0x8] sm:$0xff] }
 0x11b   : > { %631 = vst.msk [vmem:[#allocation3] sm:$0xff] %vm630_vm3, %v2397_v24  ;;  %632 = vst.msk [vmem:[#allocation3 + $0x8] sm:$0xff] %vm630_vm3, %v2397_v24  ;;  %2019 = vset.pattern.permute.xlu0 %v2398_v28  ;;  %2020 = vset.pattern.permute.xlu1 %v2398_v28  ;;  %v653_v59 = vld [vmem:[%s2816_s30 + $0x10] sm:$0xff]  ;;  %v654_v9 = vld [vmem:[%s2816_s30 + $0x18] sm:$0xff]  ;;  %s2399_s16 = smov 8   ;;  %s2400_s8 = smov 16  }
 0x11c   : > { %633 = vst.msk [vmem:[#allocation3 + $0x10] sm:$0xff] %vm630_vm3, %v2397_v24  ;;  %634 = vst.msk [vmem:[#allocation3 + $0x18] sm:$0xff] %vm630_vm3, %v2397_v24  ;;  %s2401_s26 = smov 24   ;;  %s3098_s23 = sld [smem:[#allocation30_spill]]  ;;  %vm1437_vm4 = vcmask 130048   ;;  %vm1439_vm5 = vcmask 195584  }
 0x11d   : > { %1881 = vmatpush3.bf16.msra.mxu0 %v1880_v7  ;;  %635 = vst.msk [vmem:[#allocation4] sm:$0xff] %vm630_vm3, %v2393_v1  ;;  %636 = vst.msk [vmem:[#allocation4 + $0x8] sm:$0xff] %vm630_vm3, %v2393_v1  ;;  %s3099_s27 = sld [smem:[#allocation35_spill]]  ;;  %s521_s11 = scalar_lea.vmem [#allocation20], %s2799_s12 }
 0x11e   : > { %1845 = vmatprep.subr.mxu0 %v2393_v1  ;;  %637 = vst.msk [vmem:[#allocation4 + $0x10] sm:$0xff] %vm630_vm3, %v2393_v1  ;;  %638 = vst.msk [vmem:[#allocation4 + $0x18] sm:$0xff] %vm630_vm3, %v2393_v1  ;;  %s1546_s21 = sshll.u32 %s521_s11, 4  ;;  %s3100_s5 = sld [smem:[#allocation40_spill]]  ;;  %s2963_s21 = int_to_ptr.vmem [resolvable:$true] %s1546_s21 }
 0x11f   : > { %s1532_s1 = scalar_lea.sflag [#allocation8], %s2796_s4  ;;  %s2402_s12 = smov [#allocation20]  }
 0x120   : > { %1823 = vmatmul.mubr.msk.f32.vlgmr.msra.gmra.mrb[0].mxu0 %vm538_vm1, %v2843_v8  ;;  %s2281_s19 = sshll.u32 %s2402_s12, 4  ;;  %s2282_s19 = int_to_ptr.vmem [resolvable:$false] %s2281_s19 }
 0x121   : > { %1847 = vmatprep.mubr.msk.f32.mxu0 %vm2392_vm0, %v2393_v1  ;;  %1846 = vmatpush3.msra.mxu0 %v651_v42  ;;  %s2283_s20 = scalar_lea.vmem %s2282_s19, 256  ;;  %p2284_p5 = scmp.lt.s32.totalorder %s2963_s21, %s2282_s19 }
 0x122   : > { %v2902_v38 = vld [vmem:[#allocation3] sm:$0xff]  ;;  %1855 = vmatprep.subr.mxu0 %v2393_v1  ;;  %v961_v43 = vld [vmem:[#allocation3 + $0x8] sm:$0xff]  ;;  %s1783_s22 = sshll.u32 %s3098_s23, 7 }
 0x123   : > { %v962_v46 = vld [vmem:[#allocation3 + $0x10] sm:$0xff]  ;;  %v963_v50 = vld [vmem:[#allocation3 + $0x18] sm:$0xff]  ;;  %p3101_p0 = scmp.ne.s32.totalorder %s3099_s27, 0 }
 0x124   : > { %s2961_s15 = scalar_lea.hbm %s3100_s5, %s1783_s22 }
 0x125   : > { %v1026_v28 = vld [vmem:[#allocation4 + $0x10] sm:$0xff] }
 0x1f3   : > { %v608_v11 = vpop.f32.mrb[0].mxu0 }
 0x1f4   : > { %v609_v12 = vadd.f32 %v1766_v10, %v608_v11  ;;  %v1824_v13 = vpop.f32.mrb[1].mxu0 }
 0x1f6   : > { %613 = vst.msk [vmem:[#allocation2] sm:$0xff] %vm612_vm2, %v609_v12  ;;  %625 = vrot.lane.b32.xlu1 %v609_v12, %s2394_s25  ;;  %615 = vrot.lane.b32.xlu0 %v609_v12, %s2395_s13 }
 0x1fa   : > { %620 = vrot.lane.b32.xlu0 %v609_v12, %s2396_s24 }
 0x1fd   : > { %v643_v15 = vld [vmem:[#allocation2] sm:$0xff] }
 0x1fe   : > { %1828 = vmatmul.mubr.msk.f32.vlgmr.msra.gmra.mrb[0].mxu1 %vm612_vm2, %v643_v15 }
 0x1ff   : > { %1831 = vmatpush3.xpose.msk.msra.mxu1 %vm612_vm2, %v648_v14  ;;  %1832 = vmatprep.mubr.msk.f32.mxu1 %vm2392_vm0, %v2393_v1 }
 0x200   : > { %1835 = vmatprep.subr.mxu1 %v2393_v1 }
 0x268   : > { %v626_v16 = vpop.permute.xlu1 %625  ;;  %v616_v17 = vpop.permute.xlu0 %615 }
 0x269   : > { %629 = vst.msk [vmem:[#allocation2 + $0x18] sm:$0xff] %vm612_vm2, %v626_v16  ;;  %619 = vst.msk [vmem:[#allocation2 + $0x8] sm:$0xff] %vm612_vm2, %v616_v17 }
 0x26c   : > { %v621_v18 = vpop.permute.xlu0 %620 }
 0x26d   : > { %624 = vst.msk [vmem:[#allocation2 + $0x10] sm:$0xff] %vm612_vm2, %v621_v18 }
 0x270   : > { %v644_v20 = vld [vmem:[#allocation2 + $0x8] sm:$0xff]  ;;  %v646_v23 = vld [vmem:[#allocation2 + $0x18] sm:$0xff] }
 0x271   : > { %1833 = vmatmul.mubr.msk.f32.vlgmr.msra.gmra.mrb[2].mxu1 %vm612_vm2, %v644_v20 }
 0x272   : > { %1836 = vmatpush3.xpose.msk.msra.mxu1 %vm612_vm2, %v649_v19  ;;  %1837 = vmatprep.mubr.msk.f32.mxu1 %vm2392_vm0, %v2393_v1 }
 0x273   : > { %1840 = vmatprep.subr.mxu1 %v2393_v1 }
 0x274   : > { %v645_v22 = vld [vmem:[#allocation2 + $0x10] sm:$0xff] }
 0x275   : > { %1838 = vmatmul.mubr.msk.f32.vlgmr.msra.gmra.mrb[4].mxu1 %vm612_vm2, %v645_v22 }
 0x276   : > { %1841 = vmatpush3.xpose.msk.msra.mxu1 %vm612_vm2, %v650_v21  ;;  %1842 = vmatprep.mubr.msk.f32.mxu1 %vm2392_vm0, %v2393_v1 }
 0x277   : > { %1850 = vmatprep.subr.mxu1 %v2393_v1 }
 0x279   : > { %1843 = vmatmul.mubr.msk.f32.vlgmr.msra.gmra.mrb[6].mxu1 %vm612_vm2, %v646_v23 }
 0x27a   : > { %1852 = vmatprep.mubr.msk.f32.mxu1 %vm2392_vm0, %v2393_v1  ;;  %1851 = vmatpush3.msra.mxu1 %v652_v56 }
 0x27b   : > { %1860 = vmatprep.subr.mxu1 %v2393_v1 }
 0x2d1   : > { %v728_v25 = vpop.f32.mrb[0].mxu1 }
 0x2d2   : > { %v1829_v26 = vpop.f32.mrb[1].mxu1  ;;  %v964_v27 = vsel %vm612_vm2, %v728_v25, -inf }
 0x2d3   : > { %965 = vmax.xlane.f32.xlu1 %v964_v27 }
 0x344   : > { %v804_v29 = vpop.f32.mrb[2].mxu1 }
 0x345   : > { %v1834_v30 = vpop.f32.mrb[3].mxu1  ;;  %v967_v31 = vsel %vm612_vm2, %v804_v29, -inf }
 0x346   : > { %968 = vmax.xlane.f32.xlu0 %v967_v31 }
 0x348   : > { %v880_v32 = vpop.f32.mrb[4].mxu1 }
 0x349   : > { %v1839_v33 = vpop.f32.mrb[5].mxu1  ;;  %v970_v34 = vsel %vm612_vm2, %v880_v32, -inf }
 0x34a   : > { %971 = vmax.xlane.f32.xlu0 %v970_v34 }
 0x34c   : > { %v956_v35 = vpop.f32.mrb[6].mxu1 }
 0x34d   : > { %v1844_v36 = vpop.f32.mrb[7].mxu1  ;;  %v973_v37 = vsel %vm612_vm2, %v956_v35, -inf }
 0x34e   : > { %974 = vmax.xlane.f32.xlu1 %v973_v37  ;;  %v1024_v37 = vld [vmem:[#allocation4] sm:$0xff] }
 0x360   : > { %v966_v39 = vpop.xlane.xlu1 %965 }
 0x361   : > { %v2905_v40 = vmax.f32 %v2902_v38, %v966_v39 }
 0x363   : > { %v980_v41 = vsub.f32 %v2902_v38, %v2905_v40  ;;  %1381 = vst.msk [vmem:[#allocation3] sm:$0xff] %vm630_vm3, %v2905_v40  ;;  %994 = vperm.xlu0 %2019, %v2905_v40  }
 0x365   : > { %v984_v24 = vmul.f32 1.442695, %v980_v41 }
 0x3d3   : > { %v969_v44 = vpop.xlane.xlu0 %968 }
 0x3d4   : > { %v977_v45 = vmax.f32 %v961_v43, %v969_v44 }
 0x3d6   : > { %v981_v47 = vsub.f32 %v961_v43, %v977_v45  ;;  %1382 = vst.msk [vmem:[#allocation3 + $0x8] sm:$0xff] %vm630_vm3, %v977_v45  ;;  %999 = vperm.xlu1 %2020, %v977_v45  }
 0x3d7   : > { %v972_v48 = vpop.xlane.xlu0 %971 }
 0x3d8   : > { %v978_v49 = vmax.f32 %v962_v46, %v972_v48  ;;  %v986_v18 = vmul.f32 1.442695, %v981_v47 }
 0x3da   : > { %v982_v51 = vsub.f32 %v962_v46, %v978_v49  ;;  %1383 = vst.msk [vmem:[#allocation3 + $0x10] sm:$0xff] %vm630_vm3, %v978_v49  ;;  %1004 = vperm.xlu1 %2020, %v978_v49  }
 0x3db   : > { %v975_v52 = vpop.xlane.xlu1 %974 }
 0x3dc   : > { %v979_v53 = vmax.f32 %v963_v50, %v975_v52  ;;  %v988_v16 = vmul.f32 1.442695, %v982_v51 }
 0x3de   : > { %v983_v54 = vsub.f32 %v963_v50, %v979_v53  ;;  %1384 = vst.msk [vmem:[#allocation3 + $0x18] sm:$0xff] %vm630_vm3, %v979_v53  ;;  %1009 = vperm.xlu1 %2020, %v979_v53   ;;  %v1054_v50 = vld [vmem:[#allocation5 + $0x8] sm:$0xff]  ;;  %v1055_v53 = vld [vmem:[#allocation5 + $0x10] sm:$0xff] }
 0x3e0   : > { %v990_v19 = vmul.f32 1.442695, %v983_v54 }
 0x3e2   : > { %v995_v55 = vpop.permute.xlu0 %994 }
 0x3e3   : > { %v1012_v57 = vsub.f32 %v728_v25, %v995_v55  ;;  %v1025_v25 = vld [vmem:[#allocation4 + $0x8] sm:$0xff] }
 0x3e5   : > { %v1016_v58 = vmul.f32 1.442695, %v1012_v57 }
 0x3e7   : > { %2021 = vpow2.f32 %v1016_v58 }
 0x3f1   : > { %v2022_v60 = vpop.eup %2021 }
 0x3f2   : > { %1848 = vmatmul.mubr.msk.f32.vlgmr.msra.gmra.mrb[2].mxu0 %vm612_vm2, %v2022_v60  ;;  %v1032_v17 = vsel %vm612_vm2, %v2022_v60, 0.0 }
 0x3f3   : > { %1856 = vmatpush3.msra.mxu0 %v653_v59  ;;  %1857 = vmatprep.mubr.msk.f32.mxu0 %vm2392_vm0, %v2393_v1  ;;  %v1056_v59 = vld [vmem:[#allocation5 + $0x18] sm:$0xff] }
 0x3f4   : > { %1882 = vmatprep.subr.bf16.mxu0 %v2391_v0 }
 0x455   : > { %v1000_v61 = vpop.permute.xlu1 %999 }
 0x456   : > { %v1013_v62 = vsub.f32 %v804_v29, %v1000_v61 }
 0x458   : > { %v1018_v63 = vmul.f32 1.442695, %v1013_v62 }
 0x459   : > { %v1005_v2 = vpop.permute.xlu1 %1004 }
 0x45a   : > { %2023 = vpow2.f32 %v1018_v63  ;;  %v1014_v3 = vsub.f32 %v880_v32, %v1005_v2  ;;  %v1027_v32 = vld [vmem:[#allocation4 + $0x18] sm:$0xff] }
 0x45c   : > { %v1020_v4 = vmul.f32 1.442695, %v1014_v3 }
 0x45d   : > { %v1010_v5 = vpop.permute.xlu1 %1009 }
 0x45e   : > { %2025 = vpow2.f32 %v1020_v4  ;;  %v1015_v6 = vsub.f32 %v956_v35, %v1010_v5 }
 0x460   : > { %v1022_v7 = vmul.f32 1.442695, %v1015_v6  ;;  %v1445_v6 = vld [vmem:[#allocation17] sm:$0xff] }
 0x462   : > { %2027 = vpow2.f32 %v1022_v7  ;;  %v1446_v7 = vld [vmem:[#allocation17 + $0x8] sm:$0xff] }
 0x463   : > { %2029 = vpow2.f32 %v988_v16 }
 0x464   : > { %v2024_v10 = vpop.eup %2023  ;;  %2031 = vpow2.f32 %v986_v18 }
 0x465   : > { %1853 = vmatmul.mubr.msk.f32.vlgmr.msra.gmra.mrb[8].mxu1 %vm612_vm2, %v2024_v10  ;;  %v1035_v11 = vsel %vm612_vm2, %v2024_v10, 0.0  ;;  %2033 = vpow2.f32 %v990_v19  ;;  %v1447_v10 = vld [vmem:[#allocation17 + $0x10] sm:$0xff]  ;;  %v1053_v19 = vld [vmem:[#allocation5] sm:$0xff] }
 0x466   : > { %1036 = vadd.xlane.f32.xlu1 %v1035_v11  ;;  %1861 = vmatpush3.msra.mxu1 %v654_v9  ;;  %2035 = vpow2.f32 %v984_v24  ;;  %v1883_v9 = vpack.c.bf16 %v1446_v7, %v1445_v6  ;;  %v1448_v11 = vld [vmem:[#allocation17 + $0x18] sm:$0xff] }
 0x467   : > { %1862 = vmatprep.mubr.msk.f32.mxu1 %vm2392_vm0, %v2393_v1 }
 0x468   : > { %v2026_v12 = vpop.eup %2025 }
 0x469   : > { %1858 = vmatmul.mubr.msk.f32.vlgmr.msra.gmra.mrb[4].mxu0 %vm612_vm2, %v2026_v12  ;;  %v1038_v13 = vsel %vm612_vm2, %v2026_v12, 0.0  ;;  %v1886_v12 = vpack.c.bf16 %v1448_v11, %v1447_v10 }
 0x46a   : > { %1039 = vadd.xlane.f32.xlu0 %v1038_v13  ;;  %1873 = vmatprep.mubr.msk.f32.mxu0 %vm2392_vm0, %v2393_v1 }
 0x46b   : > { %1884 = vmatpush3.bf16.msra.mxu0 %v1883_v9 }
 0x46c   : > { %v2028_v14 = vpop.eup %2027  ;;  %1885 = vmatprep.subr.bf16.mxu0 %v2391_v0 }
 0x46d   : > { %1863 = vmatmul.mubr.msk.f32.vlgmr.msra.gmra.mrb[10].mxu1 %vm612_vm2, %v2028_v14  ;;  %v1041_v15 = vsel %vm612_vm2, %v2028_v14, 0.0  ;;  %v2030_v20 = vpop.eup %2029 }
 0x46e   : > { %1042 = vadd.xlane.f32.xlu1 %v1041_v15  ;;  %v2032_v21 = vpop.eup %2031  ;;  %v1030_v30 = vmul.f32 %v2030_v20, %v1026_v28 }
 0x46f   : > { %v2034_v1 = vpop.eup %2033  ;;  %v1029_v26 = vmul.f32 %v2032_v21, %v1025_v25  ;;  %1887 = vmatpush3.bf16.msra.mxu0 %v1886_v12 }
 0x470   : > { %v1031_v34 = vmul.f32 %v2034_v1, %v1027_v32  ;;  %v2036_v35 = vpop.eup %2035 }
 0x471   : > { %v1028_v40 = vmul.f32 %v2036_v35, %v1024_v37 }
 0x472   : > { %1033 = vadd.xlane.f32.xlu1 %v1032_v17 }
 0x480   : > { %1069 = vperm.xlu0 %2019, %v2030_v20  }
 0x483   : > { %1064 = vperm.xlu1 %2020, %v2032_v21  }
 0x487   : > { %1074 = vperm.xlu1 %2020, %v2034_v1  }
 0x4c5   : > { %v2936_v22 = vpop.f32.mrb[2].mxu0 }
 0x4c6   : > { %v1849_v23 = vpop.f32.mrb[3].mxu0 }
 0x4f3   : > { %v1037_v27 = vpop.xlane.xlu1 %1036 }
 0x4f4   : > { %v1045_v29 = vadd.f32 %v1037_v27, %v1029_v26  ;;  %v1442_v27 = vld [vmem:[%s440_s29] sm:$0xff]  ;;  %s2277_s29 = scalar_lea.vmem %s2963_s21, 128 }
 0x4f5   : > { %p2278_p9 = scmp.ne.s32.totalorder %s2963_s21, %s2277_s29  ;;  %p2285_p7 = scmp.lt.s32.totalorder %s2283_s20, %s2277_s29 }
 0x4f6   : > { %1050 = vst.msk [vmem:[#allocation4 + $0x8] sm:$0xff] %vm630_vm3, %v1045_v29 }
 0x4f7   : > { %v1040_v31 = vpop.xlane.xlu0 %1039  ;;  %p2279_p3 = pnand %p2278_p9, %p3101_p0  ;;  %p2286_p8 = por %p2285_p7, %p2284_p5 }
 0x4f8   : > { %v1046_v33 = vadd.f32 %v1040_v31, %v1030_v30  ;;  %v1443_v31 = vmul.f32 %v1442_v27, %v2843_v8 }
 0x4f9   : > { %p2280_p2 = pneg %p2279_p3 }
 0x4fa   : > { %1051 = vst.msk [vmem:[#allocation4 + $0x10] sm:$0xff] %vm630_vm3, %v1046_v33 }
 0x4fb   : > { %v1043_v36 = vpop.xlane.xlu1 %1042  ;;  %p2287_p10 = pnand %p2286_p8, %p2280_p2 }
 0x4fc   : > { %v1047_v38 = vadd.f32 %v1043_v36, %v1031_v34  ;;  %v1780_v36 = vld [vmem:[#allocation18] ss:$0 sm:$0xff] }
 0x4fd   : > { %v1393_v39 = vld [vmem:[#allocation4 + $0x8] sm:$0xff] }
 0x4fe   : > { %1052 = vst.msk [vmem:[#allocation4 + $0x18] sm:$0xff] %vm630_vm3, %v1047_v38  ;;  %2037 = vrcp.f32 %v1393_v39 }
 0x4ff   : > { %v1034_v41 = vpop.xlane.xlu1 %1033  ;;  %v1070_v54 = vpop.permute.xlu0 %1069 }
 0x500   : > { %v1044_v42 = vadd.f32 %v1034_v41, %v1028_v40  ;;  %v1079_v58 = vmul.f32 %v1070_v54, %v1055_v53 }
 0x501   : > { %v1394_v43 = vld [vmem:[#allocation4 + $0x10] sm:$0xff] }
 0x502   : > { %1049 = vst.msk [vmem:[#allocation4] sm:$0xff] %vm630_vm3, %v1044_v42  ;;  %2039 = vrcp.f32 %v1394_v43 }
 0x503   : > { %v1065_v51 = vpop.permute.xlu1 %1064 }
 0x504   : > { %v1078_v52 = vmul.f32 %v1065_v51, %v1054_v50 }
 0x505   : > { %v1395_v44 = vld [vmem:[#allocation4 + $0x18] sm:$0xff] }
 0x506   : > { %2041 = vrcp.f32 %v1395_v44 }
 0x507   : > { %v1075_v60 = vpop.permute.xlu1 %1074 }
 0x508   : > { %v2038_v45 = vpop.eup %2037  ;;  %v1080_v2 = vmul.f32 %v1075_v60, %v1056_v59 }
 0x509   : > { %1407 = vperm.xlu1 %2020, %v2038_v45   ;;  %v1392_v46 = vld [vmem:[#allocation4] sm:$0xff] }
 0x50a   : > { %2043 = vrcp.f32 %v1392_v46 }
 0x50c   : > { %v2040_v47 = vpop.eup %2039 }
 0x50d   : > { %1412 = vperm.xlu1 %2020, %v2040_v47  }
 0x510   : > { %v2042_v48 = vpop.eup %2041 }
 0x511   : > { %1059 = vperm.xlu1 %2020, %v2036_v35   ;;  %1417 = vperm.xlu0 %2019, %v2042_v48  }
 0x514   : > { %v2044_v49 = vpop.eup %2043 }
 0x515   : > { %1402 = vperm.xlu0 %2019, %v2044_v49  }
 0x538   : > { %v1223_v55 = vpop.f32.mrb[8].mxu1 }
 0x539   : > { %v1374_v56 = vadd.f32 %v1223_v55, %v1078_v52  ;;  %v1854_v57 = vpop.f32.mrb[9].mxu1 }
 0x53b   : > { %1378 = vst.msk [vmem:[#allocation5 + $0x8] sm:$0xff] %vm612_vm2, %v1374_v56 }
 0x53c   : > { %v1296_v61 = vpop.f32.mrb[4].mxu0 }
 0x53d   : > { %v1375_v62 = vadd.f32 %v1296_v61, %v1079_v58  ;;  %v1859_v63 = vpop.f32.mrb[5].mxu0 }
 0x53f   : > { %1379 = vst.msk [vmem:[#allocation5 + $0x10] sm:$0xff] %vm612_vm2, %v1375_v62 }
 0x540   : > { %v1369_v3 = vpop.f32.mrb[10].mxu1 }
 0x541   : > { %v1376_v4 = vadd.f32 %v1369_v3, %v1080_v2  ;;  %v1864_v5 = vpop.f32.mrb[11].mxu1 }
 0x542   : > { %v1389_v14 = vld [vmem:[#allocation5 + $0x8] sm:$0xff] }
 0x543   : > { %1380 = vst.msk [vmem:[#allocation5 + $0x18] sm:$0xff] %vm612_vm2, %v1376_v4 }
 0x546   : > { %v1390_v17 = vld [vmem:[#allocation5 + $0x10] sm:$0xff] }
 0x54a   : > { %v1391_v21 = vld [vmem:[#allocation5 + $0x18] sm:$0xff] }
 0x588   : > { %v1408_v13 = vpop.permute.xlu1 %1407 }
 0x589   : > { %v1421_v15 = vmul.f32 %v1408_v13, %v1389_v14 }
 0x58b   : > { %1425 = vrot.lane.b32.xlu1 %v1421_v15, %s2399_s16 }
 0x58c   : > { %v1413_v16 = vpop.permute.xlu1 %1412 }
 0x58d   : > { %v1422_v18 = vmul.f32 %v1413_v16, %v1390_v17 }
 0x58f   : > { %1429 = vrot.lane.b32.xlu0 %v1422_v18, %s2400_s8 }
 0x590   : > { %v1418_v20 = vpop.permute.xlu0 %1417  ;;  %v1060_v1 = vpop.permute.xlu1 %1059 }
 0x591   : > { %v1423_v0 = vmul.f32 %v1418_v20, %v1391_v21  ;;  %v1077_v23 = vmul.f32 %v1060_v1, %v1053_v19 }
 0x593   : > { %v1373_v24 = vadd.f32 %v2936_v22, %v1077_v23  ;;  %1433 = vrot.lane.b32.xlu1 %v1423_v0, %s2401_s26 }
 0x594   : > { %v1403_v25 = vpop.permute.xlu0 %1402 }
 0x595   : > { %1377 = vst.msk [vmem:[#allocation5] sm:$0xff] %vm612_vm2, %v1373_v24 }
 0x59c   : > { %v1388_v26 = vld [vmem:[#allocation5] sm:$0xff] }
 0x59d   : > { %v1420_v29 = vmul.f32 %v1403_v25, %v1388_v26 }
 0x5fd   : > { %v1426_v28 = vpop.permute.xlu1 %1425 }
 0x5fe   : > { %v1436_v32 = vsel %vm612_vm2, %v1420_v29, %v1426_v28 }
 0x601   : > { %v1430_v30 = vpop.permute.xlu0 %1429 }
 0x602   : > { %v1438_v22 = vsel %vm1437_vm4, %v1436_v32, %v1430_v30 }
 0x605   : > { %v1434_v33 = vpop.permute.xlu1 %1433 }
 0x606   : > { %v1440_v34 = vsel %vm1439_vm5, %v1438_v22, %v1434_v33 }
 0x607   : > { %v1444_v35 = vadd.f32 %v1443_v31, %v1440_v34 }
 0x609   : > { %1874 = vmatmul.mubr.msk.f32.vlgmr.msra.gmra.mrb[6].mxu0 %vm538_vm1, %v1444_v35 }
 0x6dc   : > { %v1526_v37 = vpop.f32.mrb[6].mxu0 }
 0x6dd   : > { %v1527_v38 = vadd.f32 %v1780_v36, %v1526_v37  ;;  %v1875_v39 = vpop.f32.mrb[7].mxu0 }
 0x6df   : > { %1530 = vst.msk [vmem:[%s521_s11] sm:$0xff] %vm538_vm1, %v1527_v38 }
 0x6e0   : > { %2290 = shalt.err (!%p2287_p10)
}
 0x6e1   : > { %s2291_s4 = scalar_lea.hbm %s2961_s15, 128  ;;  %s2295_s25 = scalar_lea.hbm %s3100_s5, 256 }
 0x6e2   : > { %p2292_p1 = scmp.ne.s32.totalorder %s2961_s15, %s2291_s4  ;;  %p2296_p11 = scmp.lt.u32.totalorder %s2961_s15, %s3100_s5 }
 0x6e3   : > { %p2297_p13 = scmp.lt.u32.totalorder %s2295_s25, %s2291_s4  ;;  %p2299_p9 = scmp.lt.u32.totalorder %s2291_s4, %s2961_s15 }
 0x6e4   : > { %p2293_p6 = pnand %p2292_p1, %p3101_p0 }
 0x6e5   : > { %p2298_p12 = por %p2297_p13, %p2296_p11 }
 0x6e6   : > { %p2294_p4 = pneg %p2293_p6 }
 0x6e7   : > { %p2300_p3 = por %p2299_p9, %p2298_p12 }
 0x6e9   : > { %p2301_p2 = pnand %p2300_p3, %p2294_p4 }
 0x6eb   : > { %2304 = shalt.err (!%p2301_p2)
}
 0x6ec   : > { %1912 = dma.vmem_to_hbm [thread:$0]  (%p3101_p0), %s2963_s21, 128, %s2961_s15, %s1532_s1  }
 0x6ed PF: > { %s3102_s16 = sld [smem:[#allocation28_spill]]  ;;  %s3103_s8 = sld [smem:[#allocation33_spill]] }
 0x6ee   : > { %p3105_p7 = scmp.ge.s32.totalorder %s2379_s10, 2 }
 0x6f3   : > { %s1558_s26 = sand.u32 1, %s3102_s16   ;;  %p3104_p5 = scmp.ne.s32.totalorder %s3103_s8, 0 }
 0x6f4   : > { %s1559_s23 = scalar_lea.sflag [#allocation8], %s1558_s26 }
 0x6f5   : > { %p1941_p8 = pnand %p3105_p7, %p3104_p5 }
 0x6f7   : > { %2354 = dma.done.wait (!%p1941_p8), %s1559_s23, 128  }
 0x6f8   : > { %2356 = vsyncadd (!%p1941_p8), %s1559_s23, 4294967168  ;;  %s32_s10 = sadd.s32 1, %s2379_s10   ;;  %s3106_s22 = sld [smem:[#allocation29_spill]] }
 0x6f9   : > { %p29_p10 = scmp.ge.s32.totalorder %s32_s10, 4   ;;  %s3107_s29 = sld [smem:[#allocation36_spill]] }
 0x6fa   : > { %s3108_s11 = sld [smem:[#allocation34_spill]]  ;;  %s3109_s27 = smov %s2363_s28 }
 0x6fb   : > { %s3111_s30 = smov %s2375_s9  ;;  %31 = sbr.rel (!%p29_p10) target bundleno = 17 (0x11), region = 161 }
 0x6fe   : > { %s3110_s28 = smov %s3106_s22 }
 0x700   : > { %s3112_s9 = smov %s3108_s11 }
 0x702   :  { %1564 = vsyncpa [#allocation7], 1 }
 0x703   :  { %1566 = vsyncpa [#allocation7 + $0x1], 1 }
 0x704   :  { %1567 = vsyncpa [#allocation10], 1 }
 0x705   :  { %1569 = vsyncpa [#allocation10 + $0x1], 1 }
 0x706   :  { %1570 = vsyncpa [#allocation13], 1 }
 0x707   :  { %1572 = vsyncpa [#allocation13 + $0x1], 1 }
 0x708   :  { %1573 = vsyncpa [#allocation16], 1 }
 0x709   :  { %1574 = vsyncpa [#allocation19], 1 }
 0x70a   :  { %1575 = vsyncpa [#allocation8], 1 }
 0x70b   :  { %1577 = vsyncpa [#allocation8 + $0x1], 1 }

</bundles_post_ra>
